<compile_context>
chip_gen: v7x
topology: tpu7x:2x2x1
jax: 0.10.0
libtpu: 0.0.40
codegen_flags: <defaults>
</compile_context>

<pallas_src>
import functools

import jax
import jax.numpy as jnp
from jax.experimental import pallas as pl
from jax.experimental.pallas import tpu as pltpu


def _pointnet_pg_kernel(x_ref,
                        we1, be1, we2, be2, we3, be3,
                        wh1, bh1, wh2, bh2, wh3, bh3,
                        out_ref, *, n_actions):
    tb, _ = out_ref.shape          # (TB, OUT_PAD)
    tbn = x_ref.shape[0]           # TB * N points in this block
    n = tbn // tb

    def dense(a, w_ref, b_ref):
        # bf16 operands on the MXU, f32 accumulation, f32 bias add.
        return jnp.dot(a.astype(jnp.bfloat16), w_ref[...],
                       preferred_element_type=jnp.float32) + b_ref[...]

    # --- PointNet encoder: shared per-point MLP over all TB*N points ------
    h = jnp.maximum(dense(x_ref[...], we1, be1), 0.0)
    h = jnp.maximum(dense(h, we2, be2), 0.0)
    h = jnp.maximum(dense(h, we3, be3), 0.0)                   # (TB*N, E) f32
    enc = jnp.max(h.reshape(tb, n, h.shape[-1]), axis=1)       # (TB, E) max-pool

    # --- fused pi / value heads -------------------------------------------
    g = jnp.maximum(dense(enc, wh1, bh1), 0.0)                 # (TB, 2*H1)
    g = jnp.maximum(dense(g, wh2, bh2), 0.0)                   # (TB, 2*H2)
    o = dense(g, wh3, bh3)                                     # (TB, OUT_PAD)
    # lanes 0..A-1 = pi logits, lane A = value, lanes >A = 0 (zero-padded W/b)

    lane = jax.lax.broadcasted_iota(jnp.int32, o.shape, 1)
    masked = jnp.where(lane < n_actions, o, -jnp.inf)
    m = jnp.max(masked, axis=-1, keepdims=True)
    e = jnp.exp(masked - m)
    probs = e / jnp.sum(e, axis=-1, keepdims=True)             # pads -> exactly 0
    out_ref[...] = jnp.where(lane == n_actions, o, probs)


_OUT_PAD = 128  # lane-dense output slab width (>= n_actions + 1)


def pointnet_pg_forward(points, params, *, batch_tile=None):
    """points: (B, N, C_pt) f32.  Returns (probs (B, A), value (B,))."""
    B, N, Cpt = points.shape

    # --- batch tiling -------------------------------------------------------
    if batch_tile is None:
        batch_tile = 8 if B % 8 == 0 else B   # keep >=2 grid steps when possible
    TB = batch_tile
    assert B % TB == 0, "batch must be divisible by the batch tile"
    assert (TB * N) % 8 == 0, "TB*N must be a multiple of 8 (sublane tiling)"

    # --- fuse pi/value head weights (exact block-diagonal fusion) -----------
    (wp1, bp1), (wp2, bp2), (wp3, bp3) = params["pi"]
    (wv1, bv1), (wv2, bv2), (wv3, bv3) = params["value"]
    H1, H2 = wp2.shape
    A = wp3.shape[1]
    assert A + 1 <= _OUT_PAD

    w1 = jnp.concatenate([wp1, wv1], axis=1)                    # (E, 2*H1)
    b1 = jnp.concatenate([bp1, bv1], axis=1)                    # (1, 2*H1)
    z = jnp.zeros((H1, H2), jnp.float32)
    w2 = jnp.concatenate([jnp.concatenate([wp2, z], axis=1),
                          jnp.concatenate([z, wv2], axis=1)], axis=0)   # (2*H1, 2*H2)
    b2 = jnp.concatenate([bp2, bv2], axis=1)                    # (1, 2*H2)
    w3 = jnp.zeros((2 * H2, _OUT_PAD), jnp.float32)
    w3 = w3.at[:H2, :A].set(wp3).at[H2:, A].set(wv3[:, 0])      # (2*H2, OUT_PAD)
    b3 = jnp.zeros((1, _OUT_PAD), jnp.float32)
    b3 = b3.at[0, :A].set(bp3[0]).at[0, A].set(bv3[0, 0])

    (we1, be1), (we2, be2), (we3, be3) = params["encoder"]

    bf = jnp.bfloat16
    weight_args = [we1.astype(bf), be1, we2.astype(bf), be2, we3.astype(bf), be3,
                   w1.astype(bf), b1, w2.astype(bf), b2, w3.astype(bf), b3]

    # --- pallas call ---------------------------------------------------------
    x_flat = points.reshape(B * N, Cpt)                         # fold B into MXU M dim
    in_specs = [pl.BlockSpec((TB * N, Cpt), lambda b: (b, 0))]
    for arr in weight_args:
        in_specs.append(pl.BlockSpec(arr.shape, lambda b: (0, 0)))

    out = pl.pallas_call(
        functools.partial(_pointnet_pg_kernel, n_actions=A),
        grid=(B // TB,),
        in_specs=in_specs,
        out_specs=pl.BlockSpec((TB, _OUT_PAD), lambda b: (b, 0)),
        out_shape=jax.ShapeDtypeStruct((B, _OUT_PAD), jnp.float32),
        compiler_params=pltpu.CompilerParams(dimension_semantics=("parallel",)),
    )(x_flat, *weight_args)

    return out[:, :A], out[:, A]    # ModelOutputs(dist_params.probs, value)


# ----------------------------- reference & init ------------------------------

def _reference_forward(points, params):
    h = points
    for w, b in params["encoder"]:
        h = jnp.maximum(jnp.einsum("bnc,cd->bnd", h, w) + b, 0.0)
    enc = jnp.max(h, axis=1)
    p = enc
    for w, b in params["pi"][:-1]:
        p = jnp.maximum(p @ w + b, 0.0)
    w, b = params["pi"][-1]
    probs = jax.nn.softmax(p @ w + b, axis=-1)
    v = enc
    for w, b in params["value"][:-1]:
        v = jnp.maximum(v @ w + b, 0.0)
    w, b = params["value"][-1]
    value = (v @ w + b)[:, 0]
    return probs, value


def _init_linear(key, cin, cout):
    kw, kb = jax.random.split(key)
    scale = (2.0 / cin) ** 0.5
    w = jax.random.normal(kw, (cin, cout), jnp.float32) * scale
    b = jax.random.normal(kb, (1, cout), jnp.float32) * 0.01
    return w, b


def _init_mlp(key, sizes):
    keys = jax.random.split(key, len(sizes) - 1)
    return [_init_linear(k, cin, cout) for k, cin, cout in zip(keys, sizes[:-1], sizes[1:])]


def init_params(key, point_dim=3, encoder_channels=(32, 64), encoding_size=64,
                hidden_sizes=(64, 64), n_actions=4):
    # NOTE: torch default hidden_sizes is [512, 256]; small sizes used here per spec.
    k_enc, k_pi, k_val = jax.random.split(key, 3)
    enc_sizes = [point_dim, *encoder_channels, encoding_size]
    head_sizes = [encoding_size, *hidden_sizes]
    return {
        "encoder": _init_mlp(k_enc, enc_sizes),
        "pi": _init_mlp(k_pi, head_sizes + [n_actions]),
        "value": _init_mlp(k_val, head_sizes + [1]),
    }


if __name__ == "__main__":
    key = jax.random.PRNGKey(0)
    k_params, k_points = jax.random.split(key)

    B, N, Cpt, A = 16, 64, 3, 4            # 16 clouds x 64 points, 4 discrete actions
    params = init_params(k_params, point_dim=Cpt, encoder_channels=(32, 64),
                         encoding_size=64, hidden_sizes=(64, 64), n_actions=A)
    points = jax.random.normal(k_points, (B, N, Cpt), jnp.float32)

    probs, value = pointnet_pg_forward(points, params)   # TB=8 -> grid=(2,)
    probs = jax.block_until_ready(probs)
    value = jax.block_until_ready(value)

    assert probs.shape == (B, A) and value.shape == (B,)
    assert bool(jnp.all(jnp.isfinite(probs))) and bool(jnp.all(jnp.isfinite(value)))
    assert bool(jnp.allclose(jnp.sum(probs, axis=-1), 1.0, atol=1e-5))

    # bf16-matmul kernel vs f32 reference (loose tolerance for bf16 operands).
    ref_probs, ref_value = _reference_forward(points, params)
    assert bool(jnp.allclose(probs, ref_probs, atol=0.1, rtol=0.1))
    assert bool(jnp.allclose(value, ref_value, atol=0.1, rtol=0.1))

    print("KERNEL_OK")
</pallas_src>

<mosaic_0001>
module attributes {stable_mosaic.version = 11 : i64} {
  func.func @_pointnet_pg_kernel(%arg0: i32, %arg1: memref<512x3xf32, #tpu.memory_space<vmem>>, %arg2: memref<3x32xbf16, #tpu.memory_space<vmem>>, %arg3: memref<1x32xf32, #tpu.memory_space<vmem>>, %arg4: memref<32x64xbf16, #tpu.memory_space<vmem>>, %arg5: memref<1x64xf32, #tpu.memory_space<vmem>>, %arg6: memref<64x64xbf16, #tpu.memory_space<vmem>>, %arg7: memref<1x64xf32, #tpu.memory_space<vmem>>, %arg8: memref<64x128xbf16, #tpu.memory_space<vmem>>, %arg9: memref<1x128xf32, #tpu.memory_space<vmem>>, %arg10: memref<128x128xbf16, #tpu.memory_space<vmem>>, %arg11: memref<1x128xf32, #tpu.memory_space<vmem>>, %arg12: memref<128x128xbf16, #tpu.memory_space<vmem>>, %arg13: memref<1x128xf32, #tpu.memory_space<vmem>>, %arg14: memref<8x128xf32, #tpu.memory_space<vmem>>) attributes {dimension_semantics = [#tpu.dimension_semantics<parallel>], iteration_bounds = array<i64: 2>, scalar_prefetch = 0 : i64, scratch_operands = 0 : i64, tpu.core_type = #tpu.core_type<tc>, window_params = [{transform_indices = @transform_0, window_bounds = array<i64: 512, 3>}, {pipeline_mode = #tpu.pipeline_mode<synchronous>, transform_indices = @transform_1, window_bounds = array<i64: 3, 32>}, {pipeline_mode = #tpu.pipeline_mode<synchronous>, transform_indices = @transform_2, window_bounds = array<i64: 1, 32>}, {pipeline_mode = #tpu.pipeline_mode<synchronous>, transform_indices = @transform_3, window_bounds = array<i64: 32, 64>}, {pipeline_mode = #tpu.pipeline_mode<synchronous>, transform_indices = @transform_4, window_bounds = array<i64: 1, 64>}, {pipeline_mode = #tpu.pipeline_mode<synchronous>, transform_indices = @transform_5, window_bounds = array<i64: 64, 64>}, {pipeline_mode = #tpu.pipeline_mode<synchronous>, transform_indices = @transform_6, window_bounds = array<i64: 1, 64>}, {pipeline_mode = #tpu.pipeline_mode<synchronous>, transform_indices = @transform_7, window_bounds = array<i64: 64, 128>}, {pipeline_mode = #tpu.pipeline_mode<synchronous>, transform_indices = @transform_8, window_bounds = array<i64: 1, 128>}, {pipeline_mode = #tpu.pipeline_mode<synchronous>, transform_indices = @transform_9, window_bounds = array<i64: 128, 128>}, {pipeline_mode = #tpu.pipeline_mode<synchronous>, transform_indices = @transform_10, window_bounds = array<i64: 1, 128>}, {pipeline_mode = #tpu.pipeline_mode<synchronous>, transform_indices = @transform_11, window_bounds = array<i64: 128, 128>}, {pipeline_mode = #tpu.pipeline_mode<synchronous>, transform_indices = @transform_12, window_bounds = array<i64: 1, 128>}, {transform_indices = @transform_13, window_bounds = array<i64: 8, 128>}]} {
    %c0 = arith.constant 0 : index
    %c0_0 = arith.constant 0 : index
    %0 = vector.load %arg1[%c0, %c0_0] : memref<512x3xf32, #tpu.memory_space<vmem>>, vector<512x3xf32>
    %1 = arith.truncf %0 : vector<512x3xf32> to vector<512x3xbf16>
    %c0_1 = arith.constant 0 : index
    %c0_2 = arith.constant 0 : index
    %2 = vector.load %arg2[%c0_1, %c0_2] : memref<3x32xbf16, #tpu.memory_space<vmem>>, vector<3x32xbf16>
    %cst = arith.constant dense<0.000000e+00> : vector<512x32xf32>
    %3 = tpu.matmul %1, %2, %cst {dimension_numbers = #tpu.dot_dimension_numbers<[1], [0], [0], [1], [0, 0, 1, 1], [], []>} : vector<512x3xbf16>, vector<3x32xbf16>, vector<512x32xf32> -> vector<512x32xf32>
    %c0_3 = arith.constant 0 : index
    %c0_4 = arith.constant 0 : index
    %4 = vector.load %arg3[%c0_3, %c0_4] : memref<1x32xf32, #tpu.memory_space<vmem>>, vector<1x32xf32>
    %5 = vector.broadcast %4 : vector<1x32xf32> to vector<512x32xf32>
    %6 = arith.addf %3, %5 : vector<512x32xf32>
    %cst_5 = arith.constant 0.000000e+00 : f32
    %7 = vector.broadcast %cst_5 : f32 to vector<512x32xf32>
    %8 = arith.maximumf %6, %7 : vector<512x32xf32>
    %9 = arith.truncf %8 : vector<512x32xf32> to vector<512x32xbf16>
    %c0_6 = arith.constant 0 : index
    %c0_7 = arith.constant 0 : index
    %10 = vector.load %arg4[%c0_6, %c0_7] : memref<32x64xbf16, #tpu.memory_space<vmem>>, vector<32x64xbf16>
    %cst_8 = arith.constant dense<0.000000e+00> : vector<512x64xf32>
    %11 = tpu.matmul %9, %10, %cst_8 {dimension_numbers = #tpu.dot_dimension_numbers<[1], [0], [0], [1], [0, 0, 1, 1], [], []>} : vector<512x32xbf16>, vector<32x64xbf16>, vector<512x64xf32> -> vector<512x64xf32>
    %c0_9 = arith.constant 0 : index
    %c0_10 = arith.constant 0 : index
    %12 = vector.load %arg5[%c0_9, %c0_10] : memref<1x64xf32, #tpu.memory_space<vmem>>, vector<1x64xf32>
    %13 = vector.broadcast %12 : vector<1x64xf32> to vector<512x64xf32>
    %14 = arith.addf %11, %13 : vector<512x64xf32>
    %cst_11 = arith.constant 0.000000e+00 : f32
    %15 = vector.broadcast %cst_11 : f32 to vector<512x64xf32>
    %16 = arith.maximumf %14, %15 : vector<512x64xf32>
    %17 = arith.truncf %16 : vector<512x64xf32> to vector<512x64xbf16>
    %c0_12 = arith.constant 0 : index
    %c0_13 = arith.constant 0 : index
    %18 = vector.load %arg6[%c0_12, %c0_13] : memref<64x64xbf16, #tpu.memory_space<vmem>>, vector<64x64xbf16>
    %cst_14 = arith.constant dense<0.000000e+00> : vector<512x64xf32>
    %19 = tpu.matmul %17, %18, %cst_14 {dimension_numbers = #tpu.dot_dimension_numbers<[1], [0], [0], [1], [0, 0, 1, 1], [], []>} : vector<512x64xbf16>, vector<64x64xbf16>, vector<512x64xf32> -> vector<512x64xf32>
    %c0_15 = arith.constant 0 : index
    %c0_16 = arith.constant 0 : index
    %20 = vector.load %arg7[%c0_15, %c0_16] : memref<1x64xf32, #tpu.memory_space<vmem>>, vector<1x64xf32>
    %21 = vector.broadcast %20 : vector<1x64xf32> to vector<512x64xf32>
    %22 = arith.addf %19, %21 : vector<512x64xf32>
    %cst_17 = arith.constant 0.000000e+00 : f32
    %23 = vector.broadcast %cst_17 : f32 to vector<512x64xf32>
    %24 = arith.maximumf %22, %23 : vector<512x64xf32>
    %25 = vector.shape_cast %24 : vector<512x64xf32> to vector<8x64x64xf32>
    %cst_18 = arith.constant dense<0xFF800000> : vector<8x64xf32>
    %26 = vector.multi_reduction <maximumf>, %25, %cst_18 [1] : vector<8x64x64xf32> to vector<8x64xf32>
    %27 = arith.truncf %26 : vector<8x64xf32> to vector<8x64xbf16>
    %c0_19 = arith.constant 0 : index
    %c0_20 = arith.constant 0 : index
    %28 = vector.load %arg8[%c0_19, %c0_20] : memref<64x128xbf16, #tpu.memory_space<vmem>>, vector<64x128xbf16>
    %cst_21 = arith.constant dense<0.000000e+00> : vector<8x128xf32>
    %29 = tpu.matmul %27, %28, %cst_21 {dimension_numbers = #tpu.dot_dimension_numbers<[1], [0], [0], [1], [0, 0, 1, 1], [], []>} : vector<8x64xbf16>, vector<64x128xbf16>, vector<8x128xf32> -> vector<8x128xf32>
    %c0_22 = arith.constant 0 : index
    %c0_23 = arith.constant 0 : index
    %30 = vector.load %arg9[%c0_22, %c0_23] : memref<1x128xf32, #tpu.memory_space<vmem>>, vector<1x128xf32>
    %31 = vector.broadcast %30 : vector<1x128xf32> to vector<8x128xf32>
    %32 = arith.addf %29, %31 : vector<8x128xf32>
    %cst_24 = arith.constant 0.000000e+00 : f32
    %33 = vector.broadcast %cst_24 : f32 to vector<8x128xf32>
    %34 = arith.maximumf %32, %33 : vector<8x128xf32>
    %35 = arith.truncf %34 : vector<8x128xf32> to vector<8x128xbf16>
    %c0_25 = arith.constant 0 : index
    %c0_26 = arith.constant 0 : index
    %36 = vector.load %arg10[%c0_25, %c0_26] : memref<128x128xbf16, #tpu.memory_space<vmem>>, vector<128x128xbf16>
    %cst_27 = arith.constant dense<0.000000e+00> : vector<8x128xf32>
    %37 = tpu.matmul %35, %36, %cst_27 {dimension_numbers = #tpu.dot_dimension_numbers<[1], [0], [0], [1], [0, 0, 1, 1], [], []>} : vector<8x128xbf16>, vector<128x128xbf16>, vector<8x128xf32> -> vector<8x128xf32>
    %c0_28 = arith.constant 0 : index
    %c0_29 = arith.constant 0 : index
    %38 = vector.load %arg11[%c0_28, %c0_29] : memref<1x128xf32, #tpu.memory_space<vmem>>, vector<1x128xf32>
    %39 = vector.broadcast %38 : vector<1x128xf32> to vector<8x128xf32>
    %40 = arith.addf %37, %39 : vector<8x128xf32>
    %cst_30 = arith.constant 0.000000e+00 : f32
    %41 = vector.broadcast %cst_30 : f32 to vector<8x128xf32>
    %42 = arith.maximumf %40, %41 : vector<8x128xf32>
    %43 = arith.truncf %42 : vector<8x128xf32> to vector<8x128xbf16>
    %c0_31 = arith.constant 0 : index
    %c0_32 = arith.constant 0 : index
    %44 = vector.load %arg12[%c0_31, %c0_32] : memref<128x128xbf16, #tpu.memory_space<vmem>>, vector<128x128xbf16>
    %cst_33 = arith.constant dense<0.000000e+00> : vector<8x128xf32>
    %45 = tpu.matmul %43, %44, %cst_33 {dimension_numbers = #tpu.dot_dimension_numbers<[1], [0], [0], [1], [0, 0, 1, 1], [], []>} : vector<8x128xbf16>, vector<128x128xbf16>, vector<8x128xf32> -> vector<8x128xf32>
    %c0_34 = arith.constant 0 : index
    %c0_35 = arith.constant 0 : index
    %46 = vector.load %arg13[%c0_34, %c0_35] : memref<1x128xf32, #tpu.memory_space<vmem>>, vector<1x128xf32>
    %47 = vector.broadcast %46 : vector<1x128xf32> to vector<8x128xf32>
    %48 = arith.addf %45, %47 : vector<8x128xf32>
    %49 = tpu.iota {dimensions = array<i32: 1>} : vector<8x128xi32>
    %c4_i32 = arith.constant 4 : i32
    %50 = vector.broadcast %c4_i32 : i32 to vector<8x128xi32>
    %51 = arith.cmpi slt, %49, %50 : vector<8x128xi32>
    %cst_36 = arith.constant 0xFF800000 : f32
    %52 = vector.broadcast %cst_36 : f32 to vector<8x128xf32>
    %53 = arith.select %51, %48, %52 : vector<8x128xi1>, vector<8x128xf32>
    %cst_37 = arith.constant dense<0xFF800000> : vector<8xf32>
    %54 = vector.multi_reduction <maximumf>, %53, %cst_37 [1] : vector<8x128xf32> to vector<8xf32>
    %55 = vector.shape_cast %54 : vector<8xf32> to vector<8x1xf32>
    %56 = vector.broadcast %55 : vector<8x1xf32> to vector<8x128xf32>
    %57 = arith.subf %53, %56 : vector<8x128xf32>
    %58 = math.exp %57 : vector<8x128xf32>
    %cst_38 = arith.constant dense<0.000000e+00> : vector<8xf32>
    %59 = vector.multi_reduction <add>, %58, %cst_38 [1] : vector<8x128xf32> to vector<8xf32>
    %60 = vector.shape_cast %59 : vector<8xf32> to vector<8x1xf32>
    %61 = vector.broadcast %60 : vector<8x1xf32> to vector<8x128xf32>
    %62 = arith.divf %58, %61 : vector<8x128xf32>
    %c4_i32_39 = arith.constant 4 : i32
    %63 = vector.broadcast %c4_i32_39 : i32 to vector<8x128xi32>
    %64 = arith.cmpi eq, %49, %63 : vector<8x128xi32>
    %65 = arith.select %64, %48, %62 : vector<8x128xi1>, vector<8x128xf32>
    %c0_40 = arith.constant 0 : index
    %c0_41 = arith.constant 0 : index
    %66 = vector.load %arg14[%c0_40, %c0_41] : memref<8x128xf32, #tpu.memory_space<vmem>>, vector<8x128xf32>
    tpu.vector_store %arg14[%c0_40, %c0_41], %65 {strides = array<i32>} : memref<8x128xf32, #tpu.memory_space<vmem>>, vector<8x128xf32>,
    return
  }
  func.func @transform_0(%arg0: i32) -> (i32, i32) {
    %c0_i32 = arith.constant 0 : i32
    %c0_i32_0 = arith.constant 0 : i32
    return %arg0, %c0_i32 : i32, i32
  }
  func.func @transform_1(%arg0: i32) -> (i32, i32) {
    %c0_i32 = arith.constant 0 : i32
    %c0_i32_0 = arith.constant 0 : i32
    %c0_i32_1 = arith.constant 0 : i32
    return %c0_i32, %c0_i32_0 : i32, i32
  }
  func.func @transform_2(%arg0: i32) -> (i32, i32) {
    %c0_i32 = arith.constant 0 : i32
    %c0_i32_0 = arith.constant 0 : i32
    %c0_i32_1 = arith.constant 0 : i32
    return %c0_i32, %c0_i32_0 : i32, i32
  }
  func.func @transform_3(%arg0: i32) -> (i32, i32) {
    %c0_i32 = arith.constant 0 : i32
    %c0_i32_0 = arith.constant 0 : i32
    %c0_i32_1 = arith.constant 0 : i32
    return %c0_i32, %c0_i32_0 : i32, i32
  }
  func.func @transform_4(%arg0: i32) -> (i32, i32) {
    %c0_i32 = arith.constant 0 : i32
    %c0_i32_0 = arith.constant 0 : i32
    %c0_i32_1 = arith.constant 0 : i32
    return %c0_i32, %c0_i32_0 : i32, i32
  }
  func.func @transform_5(%arg0: i32) -> (i32, i32) {
    %c0_i32 = arith.constant 0 : i32
    %c0_i32_0 = arith.constant 0 : i32
    %c0_i32_1 = arith.constant 0 : i32
    return %c0_i32, %c0_i32_0 : i32, i32
  }
  func.func @transform_6(%arg0: i32) -> (i32, i32) {
    %c0_i32 = arith.constant 0 : i32
    %c0_i32_0 = arith.constant 0 : i32
    %c0_i32_1 = arith.constant 0 : i32
    return %c0_i32, %c0_i32_0 : i32, i32
  }
  func.func @transform_7(%arg0: i32) -> (i32, i32) {
    %c0_i32 = arith.constant 0 : i32
    %c0_i32_0 = arith.constant 0 : i32
    %c0_i32_1 = arith.constant 0 : i32
    return %c0_i32, %c0_i32_0 : i32, i32
  }
  func.func @transform_8(%arg0: i32) -> (i32, i32) {
    %c0_i32 = arith.constant 0 : i32
    %c0_i32_0 = arith.constant 0 : i32
    %c0_i32_1 = arith.constant 0 : i32
    return %c0_i32, %c0_i32_0 : i32, i32
  }
  func.func @transform_9(%arg0: i32) -> (i32, i32) {
    %c0_i32 = arith.constant 0 : i32
    %c0_i32_0 = arith.constant 0 : i32
    %c0_i32_1 = arith.constant 0 : i32
    return %c0_i32, %c0_i32_0 : i32, i32
  }
  func.func @transform_10(%arg0: i32) -> (i32, i32) {
    %c0_i32 = arith.constant 0 : i32
    %c0_i32_0 = arith.constant 0 : i32
    %c0_i32_1 = arith.constant 0 : i32
    return %c0_i32, %c0_i32_0 : i32, i32
  }
  func.func @transform_11(%arg0: i32) -> (i32, i32) {
    %c0_i32 = arith.constant 0 : i32
    %c0_i32_0 = arith.constant 0 : i32
    %c0_i32_1 = arith.constant 0 : i32
    return %c0_i32, %c0_i32_0 : i32, i32
  }
  func.func @transform_12(%arg0: i32) -> (i32, i32) {
    %c0_i32 = arith.constant 0 : i32
    %c0_i32_0 = arith.constant 0 : i32
    %c0_i32_1 = arith.constant 0 : i32
    return %c0_i32, %c0_i32_0 : i32, i32
  }
  func.func @transform_13(%arg0: i32) -> (i32, i32) {
    %c0_i32 = arith.constant 0 : i32
    %c0_i32_0 = arith.constant 0 : i32
    return %arg0, %c0_i32 : i32, i32
  }
}

</mosaic_0001>

<bundles_post_ra>
// kernel: tpu_custom_call.1
= control target key start
LH: loop header
LB: loop body
LE: loop exit
PB: predicated region body
PF: predicated region fallthrough
CT: control target
= control target key end

     0   :  { %s4036_s0 = inlined_call_operand.vmem [shape: f32[1024,3], index: 0, kind: input, shape index: {}]   ;;  %s4037_s1 = inlined_call_operand.vmem [shape: bf16[3,32], index: 1, kind: input, shape index: {}]   ;;  %s4038_s2 = inlined_call_operand.vmem [shape: f32[1,32], index: 2, kind: input, shape index: {}]   ;;  %s4039_s3 = inlined_call_operand.vmem [shape: bf16[32,64], index: 3, kind: input, shape index: {}]   ;;  %s4040_s4 = inlined_call_operand.vmem [shape: f32[1,64], index: 4, kind: input, shape index: {}]   ;;  %s4041_s5 = inlined_call_operand.vmem [shape: bf16[64,64], index: 5, kind: input, shape index: {}]   ;;  %s4042_s6 = inlined_call_operand.vmem [shape: f32[1,64], index: 6, kind: input, shape index: {}]   ;;  %s4043_s7 = inlined_call_operand.vmem [shape: bf16[64,128], index: 7, kind: input, shape index: {}]   ;;  %s4044_s8 = inlined_call_operand.vmem [shape: f32[1,128], index: 8, kind: input, shape index: {}]   ;;  %s4045_s9 = inlined_call_operand.vmem [shape: bf16[128,128], index: 9, kind: input, shape index: {}]   ;;  %s4046_s10 = inlined_call_operand.vmem [shape: f32[1,128], index: 10, kind: input, shape index: {}]   ;;  %s4047_s11 = inlined_call_operand.vmem [shape: bf16[128,128], index: 11, kind: input, shape index: {}]   ;;  %s4048_s12 = inlined_call_operand.vmem [shape: f32[1,128], index: 12, kind: input, shape index: {}]   ;;  %s4049_s13 = inlined_call_operand.hbm [shape: f32[16,128], index: 13, kind: output, shape index: {}]  }
   0x1   :  { %4050 = sst [smem:[#allocation5_spill]] %s4036_s0 }
   0x2   :  { %4051 = sst [smem:[#allocation6_spill]] %s4037_s1 }
   0x3   :  { %4052 = sst [smem:[#allocation7_spill]] %s4038_s2 }
   0x4   :  { %18 = vsyncpa [#allocation3], 0 }
   0x5   :  { %20 = vsyncpa [#allocation3 + $0x1], 0  ;;  %s3369_s25 = smov 0   ;;  %s3371_s26 = smov 0  }
   0x6   :  { %s3373_s27 = smov 0   ;;  %s3375_s28 = smov 0  }
   0x7 LB: > { %s3390_s29 = sadd.s32 4294967295, %s3293_s28   ;;  %s2633_s30 = sadd.s32 4294967294, %s3293_s28   ;;  %s3293_s28 = sphi %s3375_s28, %s4061_s28   ;;  %s3289_s27 = sphi %s3373_s27, %s4060_s27   ;;  %s3285_s26 = sphi %s3371_s26, %s4059_s26   ;;  %s3281_s25 = sphi %s3369_s25, %s4058_s25  }
   0x8   : > { %s3394_s14 = sadd.s32 1, %s3293_s28   ;;  %s311_s15 = sadd.s32 1, %s3289_s27 }
   0x9   : > { %s308_s16 = ssub.s32 %s3293_s28, %s3394_s14  ;;  %p321_p0 = scmp.ne.s32.totalorder %s3289_s27, %s3285_s26 }
   0xa   : > { %p309_p1 = scmp.eq.s32.totalorder %s308_s16, 0  ;;  %p322_p2 = scmp.eq.s32.totalorder %s3390_s29, 1 }
   0xb   : > { %p327_p3 = scmp.ne.s32.totalorder %s3285_s26, %s3281_s25  ;;  %p328_p4 = scmp.eq.s32.totalorder %s2633_s30, 1 }
   0xc   : > { %s3405_s17 = scalar_select %p309_p1, %s3289_s27, %s311_s15  }
   0xd   : > { %p3407_p5 = por %p322_p2, %p321_p0  ;;  %p3411_p6 = por %p328_p4, %p327_p3 }
   0xe   : > { %p2636_p7 = scmp.ge.s32.totalorder %s3293_s28, 1  ;;  %p391_p8 = scmp.lt.s32.totalorder %s3293_s28, 3 }
  0x10   : > { %p392_p9 = pnand %p2636_p7, %p391_p8 }
  0x11   : > { %s4055_s1 = sld [smem:[#allocation6_spill]] (!%p392_p9)  ;;  %vm643_vm0 = vcmask (!%p392_p9), 1040384   ;;  %vm644_vm1 = vcmask (!%p392_p9), 1041408   ;;  %s2638_s22 = sshll.u32 (!%p392_p9), %s3390_s29, 6  ;;  %v3295_v1 = vmov (!%p392_p9), 65535   ;;  %v3201_v5 = vld [vmem:[%s4039_s3] sm:$0xff] (!%p392_p9)  }
  0x12   : > { %395 = sbr.rel (%p392_p9) target bundleno = 1819 (0x71b), region = 72  ;;  %v645_v2 = vsel (!%p392_p9), %vm643_vm0, 4294967295, %v3295_v1  ;;  %p436_p10 = scmp.lt.s32.totalorder (!%p392_p9), %s2638_s22, 127  ;;  %vm546_vm2 = vcmask (!%p392_p9), 23552   ;;  %v3202_v29 = vld [vmem:[%s4039_s3 + $0x8] sm:$0xff] (!%p392_p9)   ;;  %vm1058_vm3 = vcmask (!%p392_p9), 261120  }
  0x13   : > { %v646_v3 = vsel (!%p392_p9), %vm644_vm1, %v645_v2, 0  ;;  %s4056_s0 = sld [smem:[#allocation5_spill]] (!%p392_p9)  ;;  %s4057_s2 = sld [smem:[#allocation7_spill]] (!%p392_p9)  ;;  %vm1579_vm4 = vcmask (!%p392_p9), 523264   ;;  %vm3297_vm5 = vmmov (!%p392_p9), 0   ;;  %vm2236_vm6 = vcmask (!%p392_p9), 1041409  }
  0x14   : > { %vm2238_vm7 = vcmask (!%p392_p9), 1042434   ;;  %vm2240_vm8 = vcmask (!%p392_p9), 1043459   ;;  %vm2242_vm9 = vcmask (!%p392_p9), 1044484   ;;  %vm2244_vm10 = vcmask (!%p392_p9), 1045509   ;;  %s432_s16 = sand.u32 (!%p392_p9), 1, %s3285_s26   ;;  %s2770_s21 = sshll.u32 (!%p392_p9), %s3390_s29, 7 }
  0x15   : > { %vm2246_vm11 = vcmask (!%p392_p9), 1046534   ;;  %vm2248_vm12 = vcmask (!%p392_p9), 1047559   ;;  %s3994_s15 = scalar_lea.hbm (!%p392_p9), %s4049_s13, %s2770_s21  ;;  %s3298_s29 = smov (!%p392_p9), [#allocation2]  }
  0x17   : > { %v538_v0 = vld [vmem:[%s4055_s1] sm:$0x3] (!%p392_p9) }
  0x18   : > { %v648_v4 = vand.u32 (!%p392_p9), %v646_v3, %v538_v0 }
  0x19   : > { %s4063_s22 = smov (!%p436_p10, %s2638_s22), 127 }
  0x1a   : > { %2899 = vmatprep.subr.bf16.mxu0 %v648_v4  ;;  %s2639_s30 = sshll.u32 %s4063_s22, 3  ;;  %3157 = vmatprep.subr.bf16.mxu1 %v648_v4 }
  0x1b   : > { %2900 = vmatpush3.bf16.msra.mxu0 %v648_v4  ;;  %s3427_s20 = scalar_lea.vmem %s4056_s0, %s2639_s30  ;;  %3158 = vmatpush3.bf16.msra.mxu1 %v648_v4  ;;  %s2561_s0 = scalar_lea.sflag [#allocation3], %s432_s16 }
  0x1c   : > { %v442_v6 = vld [vmem:[%s3427_s20] sm:$0xff]  ;;  %v443_v7 = vld [vmem:[%s3427_s20 + $0x8] sm:$0xff]  ;;  %v444_v8 = vld [vmem:[%s3427_s20 + $0x10] sm:$0xff]  ;;  %2965 = vmatprep.subr.bf16.mxu1 %v3201_v5 }
  0x1d   : > { %v506_v9 = vpack.c.bf16 %v443_v7, %v442_v6  ;;  %v445_v10 = vld [vmem:[%s3427_s20 + $0x18] sm:$0xff]  ;;  %v446_v11 = vld [vmem:[%s3427_s20 + $0x20] sm:$0xff]  ;;  %v447_v12 = vld [vmem:[%s3427_s20 + $0x28] sm:$0xff] }
  0x1e   : > { %v507_v13 = vpack.c.bf16 %v445_v10, %v444_v8  ;;  %v508_v14 = vpack.c.bf16 %v447_v12, %v446_v11  ;;  %v448_v15 = vld [vmem:[%s3427_s20 + $0x30] sm:$0xff]  ;;  %v449_v16 = vld [vmem:[%s3427_s20 + $0x38] sm:$0xff]  ;;  %v450_v17 = vld [vmem:[%s3427_s20 + $0x40] sm:$0xff] }
  0x1f   : > { %2901 = vmatprep.mubr.msk.bf16.mxu0 %vm546_vm2, %v506_v9  ;;  %v451_v18 = vld [vmem:[%s3427_s20 + $0x48] sm:$0xff]  ;;  %v509_v19 = vpack.c.bf16 %v449_v16, %v448_v15  ;;  %v452_v21 = vld [vmem:[%s3427_s20 + $0x50] sm:$0xff]  ;;  %v453_v22 = vld [vmem:[%s3427_s20 + $0x58] sm:$0xff] }
  0x20   : > { %2902 = vmatmul.mubr.msk.bf16.vlgmr.msra.gmra.mrb[0].mxu0 %vm546_vm2, %v507_v13  ;;  %v510_v20 = vpack.c.bf16 %v451_v18, %v450_v17  ;;  %v454_v23 = vld [vmem:[%s3427_s20 + $0x60] sm:$0xff]  ;;  %v455_v24 = vld [vmem:[%s3427_s20 + $0x68] sm:$0xff]  ;;  %v511_v25 = vpack.c.bf16 %v453_v22, %v452_v21  ;;  %v496_v31 = vld [vmem:[%s3427_s20 + $0x1b0] sm:$0xff] }
  0x21   : > { %2905 = vmatprep.mubr.msk.bf16.mxu0 %vm546_vm2, %v508_v14  ;;  %v512_v26 = vpack.c.bf16 %v455_v24, %v454_v23  ;;  %v494_v27 = vld [vmem:[%s3427_s20 + $0x1a0] sm:$0xff]  ;;  %v495_v28 = vld [vmem:[%s3427_s20 + $0x1a8] sm:$0xff]  ;;  %v497_v32 = vld [vmem:[%s3427_s20 + $0x1b8] sm:$0xff] }
  0x22   : > { %v532_v30 = vpack.c.bf16 %v495_v28, %v494_v27  ;;  %v498_v33 = vld [vmem:[%s3427_s20 + $0x1c0] sm:$0xff]  ;;  %v456_v34 = vld [vmem:[%s3427_s20 + $0x70] sm:$0xff]  ;;  %v457_v35 = vld [vmem:[%s3427_s20 + $0x78] sm:$0xff]  ;;  %v533_v36 = vpack.c.bf16 %v497_v32, %v496_v31 }
  0x23   : > { %v499_v37 = vld [vmem:[%s3427_s20 + $0x1c8] sm:$0xff]  ;;  %v458_v38 = vld [vmem:[%s3427_s20 + $0x80] sm:$0xff]  ;;  %v500_v41 = vld [vmem:[%s3427_s20 + $0x1d0] sm:$0xff]  ;;  %v513_v45 = vpack.c.bf16 %v457_v35, %v456_v34 }
  0x24   : > { %v459_v39 = vld [vmem:[%s3427_s20 + $0x88] sm:$0xff]  ;;  %2953 = vmatprep.mubr.msk.bf16.mxu1 %vm546_vm2, %v532_v30  ;;  %v534_v40 = vpack.c.bf16 %v499_v37, %v498_v33  ;;  %v501_v42 = vld [vmem:[%s3427_s20 + $0x1d8] sm:$0xff]  ;;  %v502_v43 = vld [vmem:[%s3427_s20 + $0x1e0] sm:$0xff] }
  0x25   : > { %2954 = vmatmul.mubr.msk.bf16.vlgmr.msra.gmra.mrb[0].mxu1 %vm546_vm2, %v533_v36  ;;  %v503_v44 = vld [vmem:[%s3427_s20 + $0x1e8] sm:$0xff]  ;;  %v514_v46 = vpack.c.bf16 %v459_v39, %v458_v38  ;;  %v535_v47 = vpack.c.bf16 %v501_v42, %v500_v41  ;;  %v460_v49 = vld [vmem:[%s3427_s20 + $0x90] sm:$0xff]  ;;  %v461_v50 = vld [vmem:[%s3427_s20 + $0x98] sm:$0xff] }
  0x26   : > { %2957 = vmatprep.mubr.msk.bf16.mxu1 %vm546_vm2, %v534_v40  ;;  %2966 = vmatpush3.bf16.msra.mxu1 %v3201_v5  ;;  %v536_v48 = vpack.c.bf16 %v503_v44, %v502_v43  ;;  %v462_v51 = vld [vmem:[%s3427_s20 + $0xa0] sm:$0xff]  ;;  %v463_v52 = vld [vmem:[%s3427_s20 + $0xa8] sm:$0xff]  ;;  %v504_v53 = vld [vmem:[%s3427_s20 + $0x1f0] sm:$0xff]  ;;  %v515_v55 = vpack.c.bf16 %v461_v50, %v460_v49 }
  0x27   : > { %2967 = vmatprep.subr.bf16.mxu1 %v3202_v29  ;;  %v505_v54 = vld [vmem:[%s3427_s20 + $0x1f8] sm:$0xff]  ;;  %v516_v56 = vpack.c.bf16 %v463_v52, %v462_v51  ;;  %v464_v58 = vld [vmem:[%s3427_s20 + $0xb0] sm:$0xff]  ;;  %v466_v60 = vld [vmem:[%s3427_s20 + $0xc0] sm:$0xff] }
  0x28   : > { %2906 = vmatmul.mubr.msk.bf16.gmra.mrb[4].mxu0 %vm546_vm2, %v509_v19  ;;  %v537_v57 = vpack.c.bf16 %v505_v54, %v504_v53  ;;  %v465_v59 = vld [vmem:[%s3427_s20 + $0xb8] sm:$0xff]  ;;  %v467_v61 = vld [vmem:[%s3427_s20 + $0xc8] sm:$0xff]  ;;  %v468_v0 = vld [vmem:[%s3427_s20 + $0xd0] sm:$0xff] }
  0x29   : > { %2909 = vmatprep.mubr.msk.bf16.mxu0 %vm546_vm2, %v510_v20  ;;  %v517_v62 = vpack.c.bf16 %v465_v59, %v464_v58  ;;  %v518_v63 = vpack.c.bf16 %v467_v61, %v466_v60  ;;  %v469_v1 = vld [vmem:[%s3427_s20 + $0xd8] sm:$0xff]  ;;  %v470_v2 = vld [vmem:[%s3427_s20 + $0xe0] sm:$0xff]  ;;  %v471_v3 = vld [vmem:[%s3427_s20 + $0xe8] sm:$0xff] }
  0x2a   : > { %2968 = vmatpush3.bf16.msra.mxu1 %v3202_v29  ;;  %v519_v4 = vpack.c.bf16 %v469_v1, %v468_v0  ;;  %v520_v5 = vpack.c.bf16 %v471_v3, %v470_v2  ;;  %v472_v6 = vld [vmem:[%s3427_s20 + $0xf0] sm:$0xff]  ;;  %v473_v7 = vld [vmem:[%s3427_s20 + $0xf8] sm:$0xff]  ;;  %v474_v8 = vld [vmem:[%s3427_s20 + $0x100] sm:$0xff] }
  0x2b   : > { %v475_v9 = vld [vmem:[%s3427_s20 + $0x108] sm:$0xff]  ;;  %v521_v10 = vpack.c.bf16 %v473_v7, %v472_v6  ;;  %v476_v12 = vld [vmem:[%s3427_s20 + $0x110] sm:$0xff]  ;;  %v477_v13 = vld [vmem:[%s3427_s20 + $0x118] sm:$0xff] }
  0x2c   : > { %v522_v11 = vpack.c.bf16 %v475_v9, %v474_v8  ;;  %v478_v14 = vld [vmem:[%s3427_s20 + $0x120] sm:$0xff]  ;;  %v479_v15 = vld [vmem:[%s3427_s20 + $0x128] sm:$0xff]  ;;  %v523_v16 = vpack.c.bf16 %v477_v13, %v476_v12  ;;  %v480_v18 = vld [vmem:[%s3427_s20 + $0x130] sm:$0xff] }
  0x2d   : > { %2958 = vmatmul.mubr.msk.bf16.gmra.mrb[4].mxu1 %vm546_vm2, %v535_v47  ;;  %v524_v17 = vpack.c.bf16 %v479_v15, %v478_v14  ;;  %v481_v19 = vld [vmem:[%s3427_s20 + $0x138] sm:$0xff]  ;;  %v482_v20 = vld [vmem:[%s3427_s20 + $0x140] sm:$0xff]  ;;  %v483_v21 = vld [vmem:[%s3427_s20 + $0x148] sm:$0xff] }
  0x2e   : > { %2961 = vmatprep.mubr.msk.bf16.mxu1 %vm546_vm2, %v536_v48  ;;  %v525_v22 = vpack.c.bf16 %v481_v19, %v480_v18  ;;  %v526_v23 = vpack.c.bf16 %v483_v21, %v482_v20  ;;  %v484_v24 = vld [vmem:[%s3427_s20 + $0x150] sm:$0xff]  ;;  %v487_v27 = vld [vmem:[%s3427_s20 + $0x168] sm:$0xff]  ;;  %v489_v31 = vld [vmem:[%s3427_s20 + $0x178] sm:$0xff] }
  0x2f   : > { %v488_v30 = vld [vmem:[%s3427_s20 + $0x170] sm:$0xff]  ;;  %v490_v32 = vld [vmem:[%s3427_s20 + $0x180] sm:$0xff]  ;;  %v491_v33 = vld [vmem:[%s3427_s20 + $0x188] sm:$0xff] }
  0x30   : > { %2910 = vmatmul.mubr.msk.bf16.gmra.mrb[8].mxu0 %vm546_vm2, %v511_v25  ;;  %v485_v25 = vld [vmem:[%s3427_s20 + $0x158] sm:$0xff]  ;;  %v529_v34 = vpack.c.bf16 %v489_v31, %v488_v30  ;;  %v530_v35 = vpack.c.bf16 %v491_v33, %v490_v32  ;;  %v492_v36 = vld [vmem:[%s3427_s20 + $0x190] sm:$0xff]  ;;  %v3203_v39 = vld [vmem:[%s4041_s5] sm:$0xff]  }
  0x31   : > { %2913 = vmatprep.mubr.msk.bf16.mxu0 %vm546_vm2, %v512_v26  ;;  %v486_v26 = vld [vmem:[%s3427_s20 + $0x160] sm:$0xff]  ;;  %v527_v28 = vpack.c.bf16 %v485_v25, %v484_v24  ;;  %v493_v37 = vld [vmem:[%s3427_s20 + $0x198] sm:$0xff]  ;;  %3033 = vmatprep.subr.bf16.mxu0 %v3203_v39  ;;  %v3204_v48 = vld [vmem:[%s4041_s5 + $0x8] sm:$0xff]   ;;  %s2637_s20 = sshll.u32 %s432_s16, 3 }
  0x32   : > { %v528_v29 = vpack.c.bf16 %v487_v27, %v486_v26  ;;  %v531_v38 = vpack.c.bf16 %v493_v37, %v492_v36  ;;  %v3534_v40 = vld [vmem:[%s4057_s2] ss:$0 sm:$0xff]  ;;  %3034 = vmatpush3.bf16.msra.mxu0 %v3203_v39  ;;  %v3205_v49 = vld [vmem:[%s4041_s5 + $0x10] sm:$0xff]   ;;  %s434_s22 = scalar_lea.vmem [#allocation2], %s2637_s20  ;;  %s3235_s20 = sshll.u32 %s3298_s29, 4  ;;  %s3236_s20 = int_to_ptr.vmem [resolvable:$false] %s3235_s20 }
  0x33   : > { %3035 = vmatprep.subr.bf16.mxu0 %v3204_v48  ;;  %s2574_s23 = sshll.u32 %s434_s22, 4  ;;  %s3237_s2 = scalar_lea.vmem %s3236_s20, 256  ;;  %s3996_s23 = int_to_ptr.vmem [resolvable:$true] %s2574_s23 }
  0x34   : > { %s3231_s1 = scalar_lea.vmem %s3996_s23, 128  ;;  %p3238_p0 = scmp.lt.s32.totalorder %s3996_s23, %s3236_s20 }
  0x35   : > { %2962 = vmatmul.mubr.msk.bf16.gmra.mrb[8].mxu1 %vm546_vm2, %v537_v57  ;;  %p3232_p11 = scmp.ne.s32.totalorder %s3996_s23, %s3231_s1  ;;  %p3239_p1 = scmp.lt.s32.totalorder %s3237_s2, %s3231_s1 }
  0x36   : > { %3036 = vmatpush3.bf16.msra.mxu0 %v3204_v48 }
  0x37   : > { %3037 = vmatprep.subr.bf16.mxu0 %v3205_v49  ;;  %p3233_p12 = pnand %p3232_p11, %p3407_p5  ;;  %p3240_p2 = por %p3239_p1, %p3238_p0 }
  0x38   : > { %2914 = vmatmul.mubr.msk.bf16.gmra.mrb[12].mxu0 %vm546_vm2, %v513_v45 }
  0x39   : > { %2917 = vmatprep.mubr.msk.bf16.mxu0 %vm546_vm2, %v514_v46  ;;  %p3234_p13 = pneg %p3233_p12 }
  0x3a   : > { %3038 = vmatpush3.bf16.msra.mxu0 %v3205_v49 }
  0x3b   : > { %p3241_p3 = pnand %p3240_p2, %p3234_p13 }
  0x40   : > { %2918 = vmatmul.mubr.msk.bf16.gmra.mrb[16].mxu0 %vm546_vm2, %v515_v55 }
  0x41   : > { %2921 = vmatprep.mubr.msk.bf16.mxu0 %vm546_vm2, %v516_v56  ;;  %v3206_v56 = vld [vmem:[%s4041_s5 + $0x18] sm:$0xff]  }
  0x42   : > { %3039 = vmatprep.subr.bf16.mxu0 %v3206_v56 }
  0x43   : > { %3040 = vmatpush3.bf16.msra.mxu0 %v3206_v56 }
  0x48   : > { %2922 = vmatmul.mubr.msk.bf16.gmra.mrb[20].mxu0 %vm546_vm2, %v517_v62 }
  0x49   : > { %2925 = vmatprep.mubr.msk.bf16.mxu0 %vm546_vm2, %v518_v63 }
  0x50   : > { %2926 = vmatmul.mubr.msk.bf16.gmra.mrb[24].mxu0 %vm546_vm2, %v519_v4 }
  0x51   : > { %2929 = vmatprep.mubr.msk.bf16.mxu0 %vm546_vm2, %v520_v5 }
  0x58   : > { %2930 = vmatmul.mubr.msk.bf16.gmra.mrb[28].mxu0 %vm546_vm2, %v521_v10 }
  0x59   : > { %2933 = vmatprep.mubr.msk.bf16.mxu0 %vm546_vm2, %v522_v11 }
  0x60   : > { %2934 = vmatmul.mubr.msk.bf16.gmra.mrb[32].mxu0 %vm546_vm2, %v523_v16 }
  0x61   : > { %2937 = vmatprep.mubr.msk.bf16.mxu0 %vm546_vm2, %v524_v17 }
  0x68   : > { %2938 = vmatmul.mubr.msk.bf16.gmra.mrb[36].mxu0 %vm546_vm2, %v525_v22 }
  0x69   : > { %2941 = vmatprep.mubr.msk.bf16.mxu0 %vm546_vm2, %v526_v23 }
  0x70   : > { %2942 = vmatmul.mubr.msk.bf16.gmra.mrb[40].mxu0 %vm546_vm2, %v527_v28 }
  0x71   : > { %2945 = vmatprep.mubr.msk.bf16.mxu0 %vm546_vm2, %v528_v29 }
  0x78   : > { %2946 = vmatmul.mubr.msk.bf16.gmra.mrb[44].mxu0 %vm546_vm2, %v529_v34 }
  0x79   : > { %2949 = vmatprep.mubr.msk.bf16.mxu0 %vm546_vm2, %v530_v35 }
  0x80   : > { %2950 = vmatmul.mubr.msk.bf16.gmra.mrb[48].mxu0 %vm546_vm2, %v531_v38 }
  0xf3   : > { %v2903_v41 = vpop.f32.mrb[0].mxu0 }
  0xf4   : > { %v693_v42 = vadd.f32 %v2903_v41, %v3534_v40  ;;  %v684_v43 = vpop.f32.mrb[1].mxu0 }
  0xf5   : > { %v685_v44 = vadd.f32 %v3534_v40, %v684_v43  ;;  %v2904_v45 = vpop.f32.mrb[2].mxu0 }
  0xf6   : > { %v696_v46 = vadd.f32 %v2904_v45, %v3534_v40  ;;  %v687_v47 = vpop.f32.mrb[3].mxu0  ;;  %v941_v51 = vmax.f32 %v693_v42, 0.0 }
  0xf7   : > { %v688_v50 = vadd.f32 %v3534_v40, %v687_v47  ;;  %v939_v53 = vmax.f32 %v685_v44, 0.0 }
  0xf8   : > { %v942_v52 = vmax.f32 %v696_v46, 0.0  ;;  %v2955_v11 = vpop.f32.mrb[0].mxu1 }
  0xf9   : > { %v940_v54 = vmax.f32 %v688_v50, 0.0  ;;  %v901_v14 = vadd.f32 %v2955_v11, %v3534_v40  ;;  %v892_v15 = vpop.f32.mrb[1].mxu1 }
  0xfa   : > { %v1004_v55 = vpack.c.bf16 %v942_v52, %v941_v51  ;;  %v893_v18 = vadd.f32 %v3534_v40, %v892_v15  ;;  %v2956_v19 = vpop.f32.mrb[2].mxu1 }
  0xfb   : > { %v1003_v57 = vpack.c.bf16 %v940_v54, %v939_v53  ;;  %v2907_v58 = vpop.f32.mrb[4].mxu0  ;;  %v993_v21 = vmax.f32 %v901_v14, 0.0  ;;  %v904_v22 = vadd.f32 %v2956_v19, %v3534_v40  ;;  %v895_v23 = vpop.f32.mrb[3].mxu1 }
  0xfc   : > { %v709_v59 = vadd.f32 %v2907_v58, %v3534_v40  ;;  %v700_v60 = vpop.f32.mrb[5].mxu0  ;;  %v991_v26 = vmax.f32 %v893_v18, 0.0  ;;  %v896_v27 = vadd.f32 %v3534_v40, %v895_v23 }
  0xfd   : > { %v701_v61 = vadd.f32 %v3534_v40, %v700_v60  ;;  %v2908_v62 = vpop.f32.mrb[6].mxu0  ;;  %2969 = vmatprep.mubr.msk.bf16.mxu1 %vm1058_vm3, %v1003_v57  ;;  %v994_v30 = vmax.f32 %v904_v22, 0.0 }
  0xfe   : > { %v712_v63 = vadd.f32 %v2908_v62, %v3534_v40  ;;  %v703_v0 = vpop.f32.mrb[7].mxu0  ;;  %2970 = vmatmul.mubr.msk.bf16.vlgmr.msra.gmra.mrb[12].mxu1 %vm1058_vm3, %v1004_v55  ;;  %v945_v2 = vmax.f32 %v709_v59, 0.0  ;;  %v992_v32 = vmax.f32 %v896_v27, 0.0 }
  0xff   : > { %v704_v1 = vadd.f32 %v3534_v40, %v703_v0  ;;  %v943_v4 = vmax.f32 %v701_v61, 0.0  ;;  %v3565_v35 = vpack.c.bf16 %v994_v30, %v993_v21 }
 0x100   : > { %v946_v3 = vmax.f32 %v712_v63, 0.0  ;;  %v3568_v38 = vpack.c.bf16 %v992_v32, %v991_v26  ;;  %v2959_v39 = vpop.f32.mrb[4].mxu1 }
 0x101   : > { %v944_v5 = vmax.f32 %v704_v1, 0.0  ;;  %v917_v43 = vadd.f32 %v2959_v39, %v3534_v40  ;;  %v908_v44 = vpop.f32.mrb[5].mxu1 }
 0x102   : > { %v1006_v6 = vpack.c.bf16 %v946_v3, %v945_v2  ;;  %v909_v47 = vadd.f32 %v3534_v40, %v908_v44  ;;  %v2960_v48 = vpop.f32.mrb[6].mxu1 }
 0x103   : > { %v1005_v7 = vpack.c.bf16 %v944_v5, %v943_v4  ;;  %v2911_v8 = vpop.f32.mrb[8].mxu0  ;;  %v997_v50 = vmax.f32 %v917_v43, 0.0  ;;  %v920_v51 = vadd.f32 %v2960_v48, %v3534_v40  ;;  %v911_v52 = vpop.f32.mrb[7].mxu1 }
 0x104   : > { %v725_v9 = vadd.f32 %v2911_v8, %v3534_v40  ;;  %v716_v10 = vpop.f32.mrb[9].mxu0  ;;  %v995_v55 = vmax.f32 %v909_v47, 0.0  ;;  %v912_v56 = vadd.f32 %v3534_v40, %v911_v52 }
 0x105   : > { %v717_v12 = vadd.f32 %v3534_v40, %v716_v10  ;;  %v2912_v13 = vpop.f32.mrb[10].mxu0  ;;  %2973 = vmatprep.mubr.msk.bf16.mxu1 %vm1058_vm3, %v1005_v7  ;;  %v998_v59 = vmax.f32 %v920_v51, 0.0 }
 0x106   : > { %v728_v16 = vadd.f32 %v2912_v13, %v3534_v40  ;;  %v719_v17 = vpop.f32.mrb[11].mxu0  ;;  %2974 = vmatmul.mubr.msk.bf16.gmra.mrb[16].mxu1 %vm1058_vm3, %v1006_v6  ;;  %v949_v24 = vmax.f32 %v725_v9, 0.0  ;;  %v996_v61 = vmax.f32 %v912_v56, 0.0 }
 0x107   : > { %v720_v20 = vadd.f32 %v3534_v40, %v719_v17  ;;  %v947_v28 = vmax.f32 %v717_v12, 0.0  ;;  %v3579_v0 = vpack.c.bf16 %v998_v59, %v997_v50 }
 0x108   : > { %v950_v25 = vmax.f32 %v728_v16, 0.0  ;;  %v3582_v3 = vpack.c.bf16 %v996_v61, %v995_v55  ;;  %v2963_v4 = vpop.f32.mrb[8].mxu1 }
 0x109   : > { %v948_v29 = vmax.f32 %v720_v20, 0.0  ;;  %v933_v7 = vadd.f32 %v2963_v4, %v3534_v40  ;;  %v924_v8 = vpop.f32.mrb[9].mxu1 }
 0x10a   : > { %v1008_v31 = vpack.c.bf16 %v950_v25, %v949_v24  ;;  %v925_v11 = vadd.f32 %v3534_v40, %v924_v8  ;;  %v2964_v12 = vpop.f32.mrb[10].mxu1 }
 0x10b   : > { %v1007_v33 = vpack.c.bf16 %v948_v29, %v947_v28  ;;  %v2915_v34 = vpop.f32.mrb[12].mxu0  ;;  %v1001_v14 = vmax.f32 %v933_v7, 0.0  ;;  %v936_v15 = vadd.f32 %v2964_v12, %v3534_v40  ;;  %v927_v16 = vpop.f32.mrb[11].mxu1 }
 0x10c   : > { %v741_v36 = vadd.f32 %v2915_v34, %v3534_v40  ;;  %v732_v37 = vpop.f32.mrb[13].mxu0  ;;  %v999_v19 = vmax.f32 %v925_v11, 0.0  ;;  %v928_v20 = vadd.f32 %v3534_v40, %v927_v16 }
 0x10d   : > { %v733_v41 = vadd.f32 %v3534_v40, %v732_v37  ;;  %v2916_v42 = vpop.f32.mrb[14].mxu0  ;;  %2977 = vmatprep.mubr.msk.bf16.mxu1 %vm1058_vm3, %v1007_v33  ;;  %v1002_v23 = vmax.f32 %v936_v15, 0.0 }
 0x10e   : > { %v744_v45 = vadd.f32 %v2916_v42, %v3534_v40  ;;  %v735_v46 = vpop.f32.mrb[15].mxu0  ;;  %2978 = vmatmul.mubr.msk.bf16.gmra.mrb[20].mxu1 %vm1058_vm3, %v1008_v31  ;;  %v953_v53 = vmax.f32 %v741_v36, 0.0  ;;  %v1000_v25 = vmax.f32 %v928_v20, 0.0 }
 0x10f   : > { %v736_v49 = vadd.f32 %v3534_v40, %v735_v46  ;;  %v951_v57 = vmax.f32 %v733_v41, 0.0  ;;  %v3593_v28 = vpack.c.bf16 %v1002_v23, %v1001_v14 }
 0x110   : > { %v954_v54 = vmax.f32 %v744_v45, 0.0  ;;  %v3596_v31 = vpack.c.bf16 %v1000_v25, %v999_v19 }
 0x111   : > { %v952_v58 = vmax.f32 %v736_v49, 0.0 }
 0x112   : > { %v1010_v60 = vpack.c.bf16 %v954_v54, %v953_v53 }
 0x113   : > { %v1009_v62 = vpack.c.bf16 %v952_v58, %v951_v57  ;;  %v2919_v63 = vpop.f32.mrb[16].mxu0 }
 0x114   : > { %v757_v1 = vadd.f32 %v2919_v63, %v3534_v40  ;;  %v748_v2 = vpop.f32.mrb[17].mxu0 }
 0x115   : > { %v749_v5 = vadd.f32 %v3534_v40, %v748_v2  ;;  %v2920_v6 = vpop.f32.mrb[18].mxu0  ;;  %2981 = vmatprep.mubr.msk.bf16.mxu1 %vm1058_vm3, %v1009_v62 }
 0x116   : > { %v760_v9 = vadd.f32 %v2920_v6, %v3534_v40  ;;  %v751_v10 = vpop.f32.mrb[19].mxu0  ;;  %2982 = vmatmul.mubr.msk.bf16.gmra.mrb[24].mxu1 %vm1058_vm3, %v1010_v60  ;;  %v957_v17 = vmax.f32 %v757_v1, 0.0 }
 0x117   : > { %v752_v13 = vadd.f32 %v3534_v40, %v751_v10  ;;  %v955_v21 = vmax.f32 %v749_v5, 0.0 }
 0x118   : > { %v958_v18 = vmax.f32 %v760_v9, 0.0 }
 0x119   : > { %v956_v22 = vmax.f32 %v752_v13, 0.0 }
 0x11a   : > { %v1012_v24 = vpack.c.bf16 %v958_v18, %v957_v17 }
 0x11b   : > { %v1011_v26 = vpack.c.bf16 %v956_v22, %v955_v21  ;;  %v2923_v27 = vpop.f32.mrb[20].mxu0 }
 0x11c   : > { %v773_v29 = vadd.f32 %v2923_v27, %v3534_v40  ;;  %v764_v30 = vpop.f32.mrb[21].mxu0 }
 0x11d   : > { %v765_v32 = vadd.f32 %v3534_v40, %v764_v30  ;;  %v2924_v33 = vpop.f32.mrb[22].mxu0  ;;  %2985 = vmatprep.mubr.msk.bf16.mxu1 %vm1058_vm3, %v1011_v26 }
 0x11e   : > { %v776_v34 = vadd.f32 %v2924_v33, %v3534_v40  ;;  %v767_v36 = vpop.f32.mrb[23].mxu0  ;;  %2986 = vmatmul.mubr.msk.bf16.gmra.mrb[28].mxu1 %vm1058_vm3, %v1012_v24  ;;  %v961_v39 = vmax.f32 %v773_v29, 0.0 }
 0x11f   : > { %v768_v37 = vadd.f32 %v3534_v40, %v767_v36  ;;  %v959_v42 = vmax.f32 %v765_v32, 0.0 }
 0x120   : > { %v962_v41 = vmax.f32 %v776_v34, 0.0 }
 0x121   : > { %v960_v43 = vmax.f32 %v768_v37, 0.0 }
 0x122   : > { %v1014_v44 = vpack.c.bf16 %v962_v41, %v961_v39 }
 0x123   : > { %v1013_v45 = vpack.c.bf16 %v960_v43, %v959_v42  ;;  %v2927_v46 = vpop.f32.mrb[24].mxu0 }
 0x124   : > { %v789_v47 = vadd.f32 %v2927_v46, %v3534_v40  ;;  %v780_v48 = vpop.f32.mrb[25].mxu0 }
 0x125   : > { %v781_v49 = vadd.f32 %v3534_v40, %v780_v48  ;;  %v2928_v50 = vpop.f32.mrb[26].mxu0  ;;  %2989 = vmatprep.mubr.msk.bf16.mxu1 %vm1058_vm3, %v1013_v45 }
 0x126   : > { %v792_v51 = vadd.f32 %v2928_v50, %v3534_v40  ;;  %v783_v52 = vpop.f32.mrb[27].mxu0  ;;  %2990 = vmatmul.mubr.msk.bf16.gmra.mrb[32].mxu1 %vm1058_vm3, %v1014_v44  ;;  %v965_v54 = vmax.f32 %v789_v47, 0.0 }
 0x127   : > { %v784_v53 = vadd.f32 %v3534_v40, %v783_v52  ;;  %v963_v56 = vmax.f32 %v781_v49, 0.0 }
 0x128   : > { %v966_v55 = vmax.f32 %v792_v51, 0.0 }
 0x129   : > { %v964_v57 = vmax.f32 %v784_v53, 0.0 }
 0x12a   : > { %v1016_v58 = vpack.c.bf16 %v966_v55, %v965_v54 }
 0x12b   : > { %v1015_v59 = vpack.c.bf16 %v964_v57, %v963_v56  ;;  %v2931_v60 = vpop.f32.mrb[28].mxu0 }
 0x12c   : > { %v805_v61 = vadd.f32 %v2931_v60, %v3534_v40  ;;  %v796_v62 = vpop.f32.mrb[29].mxu0 }
 0x12d   : > { %v797_v63 = vadd.f32 %v3534_v40, %v796_v62  ;;  %v2932_v1 = vpop.f32.mrb[30].mxu0  ;;  %2993 = vmatprep.mubr.msk.bf16.mxu1 %vm1058_vm3, %v1015_v59 }
 0x12e   : > { %v808_v2 = vadd.f32 %v2932_v1, %v3534_v40  ;;  %v799_v4 = vpop.f32.mrb[31].mxu0  ;;  %2994 = vmatmul.mubr.msk.bf16.gmra.mrb[36].mxu1 %vm1058_vm3, %v1016_v58  ;;  %v969_v6 = vmax.f32 %v805_v61, 0.0 }
 0x12f   : > { %v800_v5 = vadd.f32 %v3534_v40, %v799_v4  ;;  %v967_v8 = vmax.f32 %v797_v63, 0.0 }
 0x130   : > { %v970_v7 = vmax.f32 %v808_v2, 0.0 }
 0x131   : > { %v968_v9 = vmax.f32 %v800_v5, 0.0 }
 0x132   : > { %v1018_v10 = vpack.c.bf16 %v970_v7, %v969_v6 }
 0x133   : > { %v1017_v11 = vpack.c.bf16 %v968_v9, %v967_v8  ;;  %v2935_v12 = vpop.f32.mrb[32].mxu0 }
 0x134   : > { %v821_v13 = vadd.f32 %v2935_v12, %v3534_v40  ;;  %v812_v14 = vpop.f32.mrb[33].mxu0 }
 0x135   : > { %v813_v15 = vadd.f32 %v3534_v40, %v812_v14  ;;  %v2936_v16 = vpop.f32.mrb[34].mxu0  ;;  %2997 = vmatprep.mubr.msk.bf16.mxu1 %vm1058_vm3, %v1017_v11 }
 0x136   : > { %v824_v17 = vadd.f32 %v2936_v16, %v3534_v40  ;;  %v815_v18 = vpop.f32.mrb[35].mxu0  ;;  %2998 = vmatmul.mubr.msk.bf16.gmra.mrb[40].mxu1 %vm1058_vm3, %v1018_v10  ;;  %v973_v20 = vmax.f32 %v821_v13, 0.0 }
 0x137   : > { %v816_v19 = vadd.f32 %v3534_v40, %v815_v18  ;;  %v971_v22 = vmax.f32 %v813_v15, 0.0 }
 0x138   : > { %v974_v21 = vmax.f32 %v824_v17, 0.0 }
 0x139   : > { %v972_v23 = vmax.f32 %v816_v19, 0.0 }
 0x13a   : > { %v1020_v24 = vpack.c.bf16 %v974_v21, %v973_v20 }
 0x13b   : > { %v1019_v25 = vpack.c.bf16 %v972_v23, %v971_v22  ;;  %v2939_v26 = vpop.f32.mrb[36].mxu0 }
 0x13c   : > { %v837_v27 = vadd.f32 %v2939_v26, %v3534_v40  ;;  %v828_v29 = vpop.f32.mrb[37].mxu0 }
 0x13d   : > { %v829_v30 = vadd.f32 %v3534_v40, %v828_v29  ;;  %v2940_v32 = vpop.f32.mrb[38].mxu0  ;;  %3001 = vmatprep.mubr.msk.bf16.mxu1 %vm1058_vm3, %v1019_v25 }
 0x13e   : > { %v840_v33 = vadd.f32 %v2940_v32, %v3534_v40  ;;  %v831_v34 = vpop.f32.mrb[39].mxu0  ;;  %3002 = vmatmul.mubr.msk.bf16.gmra.mrb[44].mxu1 %vm1058_vm3, %v1020_v24  ;;  %v977_v37 = vmax.f32 %v837_v27, 0.0 }
 0x13f   : > { %v832_v36 = vadd.f32 %v3534_v40, %v831_v34  ;;  %v975_v41 = vmax.f32 %v829_v30, 0.0 }
 0x140   : > { %v978_v39 = vmax.f32 %v840_v33, 0.0 }
 0x141   : > { %v976_v42 = vmax.f32 %v832_v36, 0.0 }
 0x142   : > { %v1022_v43 = vpack.c.bf16 %v978_v39, %v977_v37 }
 0x143   : > { %v1021_v44 = vpack.c.bf16 %v976_v42, %v975_v41  ;;  %v2943_v45 = vpop.f32.mrb[40].mxu0 }
 0x144   : > { %v853_v46 = vadd.f32 %v2943_v45, %v3534_v40  ;;  %v844_v47 = vpop.f32.mrb[41].mxu0 }
 0x145   : > { %v845_v48 = vadd.f32 %v3534_v40, %v844_v47  ;;  %v2944_v49 = vpop.f32.mrb[42].mxu0  ;;  %3005 = vmatprep.mubr.msk.bf16.mxu1 %vm1058_vm3, %v1021_v44 }
 0x146   : > { %v856_v50 = vadd.f32 %v2944_v49, %v3534_v40  ;;  %v847_v51 = vpop.f32.mrb[43].mxu0  ;;  %3006 = vmatmul.mubr.msk.bf16.gmra.mrb[48].mxu1 %vm1058_vm3, %v1022_v43  ;;  %v981_v53 = vmax.f32 %v853_v46, 0.0 }
 0x147   : > { %v848_v52 = vadd.f32 %v3534_v40, %v847_v51  ;;  %v979_v55 = vmax.f32 %v845_v48, 0.0 }
 0x148   : > { %v982_v54 = vmax.f32 %v856_v50, 0.0 }
 0x149   : > { %v980_v56 = vmax.f32 %v848_v52, 0.0 }
 0x14a   : > { %v1024_v57 = vpack.c.bf16 %v982_v54, %v981_v53 }
 0x14b   : > { %v1023_v58 = vpack.c.bf16 %v980_v56, %v979_v55  ;;  %v2947_v59 = vpop.f32.mrb[44].mxu0 }
 0x14c   : > { %v869_v60 = vadd.f32 %v2947_v59, %v3534_v40  ;;  %v860_v61 = vpop.f32.mrb[45].mxu0 }
 0x14d   : > { %v861_v62 = vadd.f32 %v3534_v40, %v860_v61  ;;  %v2948_v63 = vpop.f32.mrb[46].mxu0  ;;  %3009 = vmatprep.mubr.msk.bf16.mxu1 %vm1058_vm3, %v1023_v58 }
 0x14e   : > { %v872_v1 = vadd.f32 %v2948_v63, %v3534_v40  ;;  %v863_v2 = vpop.f32.mrb[47].mxu0  ;;  %3010 = vmatmul.mubr.msk.bf16.gmra.mrb[52].mxu1 %vm1058_vm3, %v1024_v57  ;;  %v985_v5 = vmax.f32 %v869_v60, 0.0 }
 0x14f   : > { %v864_v4 = vadd.f32 %v3534_v40, %v863_v2  ;;  %v983_v7 = vmax.f32 %v861_v62, 0.0 }
 0x150   : > { %v986_v6 = vmax.f32 %v872_v1, 0.0 }
 0x151   : > { %v984_v8 = vmax.f32 %v864_v4, 0.0 }
 0x152   : > { %v1026_v9 = vpack.c.bf16 %v986_v6, %v985_v5 }
 0x153   : > { %v1025_v10 = vpack.c.bf16 %v984_v8, %v983_v7  ;;  %v2951_v11 = vpop.f32.mrb[48].mxu0 }
 0x154   : > { %v885_v12 = vadd.f32 %v2951_v11, %v3534_v40  ;;  %v876_v13 = vpop.f32.mrb[49].mxu0 }
 0x155   : > { %v877_v14 = vadd.f32 %v3534_v40, %v876_v13  ;;  %v2952_v15 = vpop.f32.mrb[50].mxu0  ;;  %3013 = vmatprep.mubr.msk.bf16.mxu1 %vm1058_vm3, %v1025_v10 }
 0x156   : > { %v888_v16 = vadd.f32 %v2952_v15, %v3534_v40  ;;  %v879_v17 = vpop.f32.mrb[51].mxu0  ;;  %3014 = vmatmul.mubr.msk.bf16.gmra.mrb[56].mxu1 %vm1058_vm3, %v1026_v9  ;;  %v989_v19 = vmax.f32 %v885_v12, 0.0 }
 0x157   : > { %v880_v18 = vadd.f32 %v3534_v40, %v879_v17  ;;  %v987_v21 = vmax.f32 %v877_v14, 0.0  ;;  %v3662_v40 = vld [vmem:[%s4040_s4] ss:$0 sm:$0xff] }
 0x158   : > { %v990_v20 = vmax.f32 %v888_v16, 0.0 }
 0x159   : > { %v988_v22 = vmax.f32 %v880_v18, 0.0 }
 0x15a   : > { %v1028_v23 = vpack.c.bf16 %v990_v20, %v989_v19 }
 0x15b   : > { %v1027_v24 = vpack.c.bf16 %v988_v22, %v987_v21 }
 0x15d   : > { %3017 = vmatprep.mubr.msk.bf16.mxu1 %vm1058_vm3, %v1027_v24 }
 0x15e   : > { %3018 = vmatmul.mubr.msk.bf16.gmra.mrb[60].mxu1 %vm1058_vm3, %v1028_v23 }
 0x15f   : > { %3021 = vmatprep.mubr.msk.bf16.mxu1 %vm1058_vm3, %v3568_v38 }
 0x166   : > { %3022 = vmatmul.mubr.msk.bf16.gmra.mrb[64].mxu1 %vm1058_vm3, %v3565_v35 }
 0x167   : > { %3025 = vmatprep.mubr.msk.bf16.mxu1 %vm1058_vm3, %v3582_v3 }
 0x16e   : > { %3026 = vmatmul.mubr.msk.bf16.gmra.mrb[68].mxu1 %vm1058_vm3, %v3579_v0 }
 0x16f   : > { %3029 = vmatprep.mubr.msk.bf16.mxu1 %vm1058_vm3, %v3596_v31 }
 0x176   : > { %3030 = vmatmul.mubr.msk.bf16.gmra.mrb[72].mxu1 %vm1058_vm3, %v3593_v28 }
 0x1d1   : > { %v2971_v38 = vpop.f32.mrb[12].mxu1 }
 0x1d2   : > { %v1198_v35 = vadd.f32 %v2971_v38, %v3662_v40  ;;  %v1189_v25 = vpop.f32.mrb[13].mxu1 }
 0x1d3   : > { %v1190_v3 = vadd.f32 %v3662_v40, %v1189_v25  ;;  %v2972_v26 = vpop.f32.mrb[14].mxu1 }
 0x1d4   : > { %v1201_v0 = vadd.f32 %v2972_v26, %v3662_v40  ;;  %v1192_v27 = vpop.f32.mrb[15].mxu1  ;;  %v1446_v29 = vmax.f32 %v1198_v35, 0.0 }
 0x1d5   : > { %v1193_v31 = vadd.f32 %v3662_v40, %v1192_v27  ;;  %v1444_v28 = vmax.f32 %v1190_v3, 0.0 }
 0x1d6   : > { %v1447_v30 = vmax.f32 %v1201_v0, 0.0 }
 0x1d7   : > { %v1445_v32 = vmax.f32 %v1193_v31, 0.0 }
 0x1d8   : > { %v1509_v33 = vpack.c.bf16 %v1447_v30, %v1446_v29 }
 0x1d9   : > { %v1508_v34 = vpack.c.bf16 %v1445_v32, %v1444_v28  ;;  %v2975_v36 = vpop.f32.mrb[16].mxu1 }
 0x1da   : > { %v1214_v37 = vadd.f32 %v2975_v36, %v3662_v40  ;;  %v1205_v39 = vpop.f32.mrb[17].mxu1 }
 0x1db   : > { %v1206_v41 = vadd.f32 %v3662_v40, %v1205_v39  ;;  %v2976_v42 = vpop.f32.mrb[18].mxu1  ;;  %3041 = vmatprep.mubr.msk.bf16.mxu0 %vm1579_vm4, %v1508_v34 }
 0x1dc   : > { %v1217_v43 = vadd.f32 %v2976_v42, %v3662_v40  ;;  %v1208_v44 = vpop.f32.mrb[19].mxu1  ;;  %3042 = vmatmul.mubr.msk.bf16.vlgmr.msra.gmra.mrb[52].mxu0 %vm1579_vm4, %v1509_v33  ;;  %v1450_v46 = vmax.f32 %v1214_v37, 0.0 }
 0x1dd   : > { %v1209_v45 = vadd.f32 %v3662_v40, %v1208_v44  ;;  %v1448_v48 = vmax.f32 %v1206_v41, 0.0 }
 0x1de   : > { %v1451_v47 = vmax.f32 %v1217_v43, 0.0 }
 0x1df   : > { %v1449_v49 = vmax.f32 %v1209_v45, 0.0 }
 0x1e0   : > { %v1511_v50 = vpack.c.bf16 %v1451_v47, %v1450_v46 }
 0x1e1   : > { %v1510_v51 = vpack.c.bf16 %v1449_v49, %v1448_v48  ;;  %v2979_v52 = vpop.f32.mrb[20].mxu1 }
 0x1e2   : > { %v1230_v53 = vadd.f32 %v2979_v52, %v3662_v40  ;;  %v1221_v54 = vpop.f32.mrb[21].mxu1 }
 0x1e3   : > { %v1222_v55 = vadd.f32 %v3662_v40, %v1221_v54  ;;  %v2980_v56 = vpop.f32.mrb[22].mxu1  ;;  %3045 = vmatprep.mubr.msk.bf16.mxu0 %vm1579_vm4, %v1510_v51 }
 0x1e4   : > { %v1233_v57 = vadd.f32 %v2980_v56, %v3662_v40  ;;  %v1224_v58 = vpop.f32.mrb[23].mxu1  ;;  %3046 = vmatmul.mubr.msk.bf16.gmra.mrb[56].mxu0 %vm1579_vm4, %v1511_v50  ;;  %v1454_v60 = vmax.f32 %v1230_v53, 0.0 }
 0x1e5   : > { %v1225_v59 = vadd.f32 %v3662_v40, %v1224_v58  ;;  %v1452_v62 = vmax.f32 %v1222_v55, 0.0 }
 0x1e6   : > { %v1455_v61 = vmax.f32 %v1233_v57, 0.0 }
 0x1e7   : > { %v1453_v63 = vmax.f32 %v1225_v59, 0.0 }
 0x1e8   : > { %v1513_v1 = vpack.c.bf16 %v1455_v61, %v1454_v60 }
 0x1e9   : > { %v1512_v2 = vpack.c.bf16 %v1453_v63, %v1452_v62  ;;  %v2983_v4 = vpop.f32.mrb[24].mxu1 }
 0x1ea   : > { %v1246_v5 = vadd.f32 %v2983_v4, %v3662_v40  ;;  %v1237_v6 = vpop.f32.mrb[25].mxu1 }
 0x1eb   : > { %v1238_v7 = vadd.f32 %v3662_v40, %v1237_v6  ;;  %v2984_v8 = vpop.f32.mrb[26].mxu1  ;;  %3049 = vmatprep.mubr.msk.bf16.mxu0 %vm1579_vm4, %v1512_v2 }
 0x1ec   : > { %v1249_v9 = vadd.f32 %v2984_v8, %v3662_v40  ;;  %v1240_v10 = vpop.f32.mrb[27].mxu1  ;;  %3050 = vmatmul.mubr.msk.bf16.gmra.mrb[60].mxu0 %vm1579_vm4, %v1513_v1  ;;  %v1458_v12 = vmax.f32 %v1246_v5, 0.0 }
 0x1ed   : > { %v1241_v11 = vadd.f32 %v3662_v40, %v1240_v10  ;;  %v1456_v14 = vmax.f32 %v1238_v7, 0.0 }
 0x1ee   : > { %v1459_v13 = vmax.f32 %v1249_v9, 0.0 }
 0x1ef   : > { %v1457_v15 = vmax.f32 %v1241_v11, 0.0 }
 0x1f0   : > { %v1515_v16 = vpack.c.bf16 %v1459_v13, %v1458_v12 }
 0x1f1   : > { %v1514_v17 = vpack.c.bf16 %v1457_v15, %v1456_v14  ;;  %v2987_v18 = vpop.f32.mrb[28].mxu1 }
 0x1f2   : > { %v1262_v19 = vadd.f32 %v2987_v18, %v3662_v40  ;;  %v1253_v20 = vpop.f32.mrb[29].mxu1 }
 0x1f3   : > { %v1254_v21 = vadd.f32 %v3662_v40, %v1253_v20  ;;  %v2988_v22 = vpop.f32.mrb[30].mxu1  ;;  %3053 = vmatprep.mubr.msk.bf16.mxu0 %vm1579_vm4, %v1514_v17 }
 0x1f4   : > { %v1265_v23 = vadd.f32 %v2988_v22, %v3662_v40  ;;  %v1256_v24 = vpop.f32.mrb[31].mxu1  ;;  %3054 = vmatmul.mubr.msk.bf16.gmra.mrb[64].mxu0 %vm1579_vm4, %v1515_v16  ;;  %v1462_v35 = vmax.f32 %v1262_v19, 0.0 }
 0x1f5   : > { %v1257_v38 = vadd.f32 %v3662_v40, %v1256_v24  ;;  %v1460_v3 = vmax.f32 %v1254_v21, 0.0 }
 0x1f6   : > { %v1463_v25 = vmax.f32 %v1265_v23, 0.0 }
 0x1f7   : > { %v1461_v26 = vmax.f32 %v1257_v38, 0.0 }
 0x1f8   : > { %v1517_v0 = vpack.c.bf16 %v1463_v25, %v1462_v35 }
 0x1f9   : > { %v1516_v27 = vpack.c.bf16 %v1461_v26, %v1460_v3  ;;  %v2991_v31 = vpop.f32.mrb[32].mxu1 }
 0x1fa   : > { %v1278_v29 = vadd.f32 %v2991_v31, %v3662_v40  ;;  %v1269_v30 = vpop.f32.mrb[33].mxu1 }
 0x1fb   : > { %v1270_v28 = vadd.f32 %v3662_v40, %v1269_v30  ;;  %v2992_v32 = vpop.f32.mrb[34].mxu1  ;;  %3057 = vmatprep.mubr.msk.bf16.mxu0 %vm1579_vm4, %v1516_v27 }
 0x1fc   : > { %v1281_v33 = vadd.f32 %v2992_v32, %v3662_v40  ;;  %v1272_v34 = vpop.f32.mrb[35].mxu1  ;;  %3058 = vmatmul.mubr.msk.bf16.gmra.mrb[68].mxu0 %vm1579_vm4, %v1517_v0  ;;  %v1466_v37 = vmax.f32 %v1278_v29, 0.0 }
 0x1fd   : > { %v1273_v36 = vadd.f32 %v3662_v40, %v1272_v34  ;;  %v1464_v41 = vmax.f32 %v1270_v28, 0.0 }
 0x1fe   : > { %v1467_v39 = vmax.f32 %v1281_v33, 0.0 }
 0x1ff   : > { %v1465_v42 = vmax.f32 %v1273_v36, 0.0 }
 0x200   : > { %v1519_v43 = vpack.c.bf16 %v1467_v39, %v1466_v37 }
 0x201   : > { %v1518_v44 = vpack.c.bf16 %v1465_v42, %v1464_v41  ;;  %v2995_v45 = vpop.f32.mrb[36].mxu1 }
 0x202   : > { %v1294_v46 = vadd.f32 %v2995_v45, %v3662_v40  ;;  %v1285_v47 = vpop.f32.mrb[37].mxu1 }
 0x203   : > { %v1286_v48 = vadd.f32 %v3662_v40, %v1285_v47  ;;  %v2996_v49 = vpop.f32.mrb[38].mxu1  ;;  %3061 = vmatprep.mubr.msk.bf16.mxu0 %vm1579_vm4, %v1518_v44 }
 0x204   : > { %v1297_v50 = vadd.f32 %v2996_v49, %v3662_v40  ;;  %v1288_v51 = vpop.f32.mrb[39].mxu1  ;;  %3062 = vmatmul.mubr.msk.bf16.gmra.mrb[72].mxu0 %vm1579_vm4, %v1519_v43  ;;  %v1470_v53 = vmax.f32 %v1294_v46, 0.0 }
 0x205   : > { %v1289_v52 = vadd.f32 %v3662_v40, %v1288_v51  ;;  %v1468_v55 = vmax.f32 %v1286_v48, 0.0 }
 0x206   : > { %v1471_v54 = vmax.f32 %v1297_v50, 0.0 }
 0x207   : > { %v1469_v56 = vmax.f32 %v1289_v52, 0.0 }
 0x208   : > { %v1521_v57 = vpack.c.bf16 %v1471_v54, %v1470_v53 }
 0x209   : > { %v1520_v58 = vpack.c.bf16 %v1469_v56, %v1468_v55  ;;  %v2999_v59 = vpop.f32.mrb[40].mxu1 }
 0x20a   : > { %v1310_v60 = vadd.f32 %v2999_v59, %v3662_v40  ;;  %v1301_v61 = vpop.f32.mrb[41].mxu1 }
 0x20b   : > { %v1302_v62 = vadd.f32 %v3662_v40, %v1301_v61  ;;  %v3000_v63 = vpop.f32.mrb[42].mxu1  ;;  %3065 = vmatprep.mubr.msk.bf16.mxu0 %vm1579_vm4, %v1520_v58 }
 0x20c   : > { %v1313_v1 = vadd.f32 %v3000_v63, %v3662_v40  ;;  %v1304_v2 = vpop.f32.mrb[43].mxu1  ;;  %3066 = vmatmul.mubr.msk.bf16.gmra.mrb[76].mxu0 %vm1579_vm4, %v1521_v57  ;;  %v1474_v5 = vmax.f32 %v1310_v60, 0.0 }
 0x20d   : > { %v1305_v4 = vadd.f32 %v3662_v40, %v1304_v2  ;;  %v1472_v7 = vmax.f32 %v1302_v62, 0.0 }
 0x20e   : > { %v1475_v6 = vmax.f32 %v1313_v1, 0.0 }
 0x20f   : > { %v1473_v8 = vmax.f32 %v1305_v4, 0.0 }
 0x210   : > { %v1523_v9 = vpack.c.bf16 %v1475_v6, %v1474_v5 }
 0x211   : > { %v1522_v10 = vpack.c.bf16 %v1473_v8, %v1472_v7  ;;  %v3003_v11 = vpop.f32.mrb[44].mxu1 }
 0x212   : > { %v1326_v12 = vadd.f32 %v3003_v11, %v3662_v40  ;;  %v1317_v13 = vpop.f32.mrb[45].mxu1 }
 0x213   : > { %v1318_v14 = vadd.f32 %v3662_v40, %v1317_v13  ;;  %v3004_v15 = vpop.f32.mrb[46].mxu1  ;;  %3069 = vmatprep.mubr.msk.bf16.mxu0 %vm1579_vm4, %v1522_v10 }
 0x214   : > { %v1329_v16 = vadd.f32 %v3004_v15, %v3662_v40  ;;  %v1320_v17 = vpop.f32.mrb[47].mxu1  ;;  %3070 = vmatmul.mubr.msk.bf16.gmra.mrb[80].mxu0 %vm1579_vm4, %v1523_v9  ;;  %v1478_v19 = vmax.f32 %v1326_v12, 0.0 }
 0x215   : > { %v1321_v18 = vadd.f32 %v3662_v40, %v1320_v17  ;;  %v1476_v21 = vmax.f32 %v1318_v14, 0.0 }
 0x216   : > { %v1479_v20 = vmax.f32 %v1329_v16, 0.0 }
 0x217   : > { %v1477_v22 = vmax.f32 %v1321_v18, 0.0 }
 0x218   : > { %v1525_v23 = vpack.c.bf16 %v1479_v20, %v1478_v19 }
 0x219   : > { %v1524_v24 = vpack.c.bf16 %v1477_v22, %v1476_v21  ;;  %v3007_v38 = vpop.f32.mrb[48].mxu1 }
 0x21a   : > { %v1342_v35 = vadd.f32 %v3007_v38, %v3662_v40  ;;  %v1333_v25 = vpop.f32.mrb[49].mxu1 }
 0x21b   : > { %v1334_v3 = vadd.f32 %v3662_v40, %v1333_v25  ;;  %v3008_v26 = vpop.f32.mrb[50].mxu1  ;;  %3073 = vmatprep.mubr.msk.bf16.mxu0 %vm1579_vm4, %v1524_v24 }
 0x21c   : > { %v1345_v0 = vadd.f32 %v3008_v26, %v3662_v40  ;;  %v1336_v27 = vpop.f32.mrb[51].mxu1  ;;  %3074 = vmatmul.mubr.msk.bf16.gmra.mrb[84].mxu0 %vm1579_vm4, %v1525_v23  ;;  %v1482_v29 = vmax.f32 %v1342_v35, 0.0 }
 0x21d   : > { %v1337_v31 = vadd.f32 %v3662_v40, %v1336_v27  ;;  %v1480_v28 = vmax.f32 %v1334_v3, 0.0 }
 0x21e   : > { %v1483_v30 = vmax.f32 %v1345_v0, 0.0 }
 0x21f   : > { %v1481_v32 = vmax.f32 %v1337_v31, 0.0 }
 0x220   : > { %v1527_v33 = vpack.c.bf16 %v1483_v30, %v1482_v29 }
 0x221   : > { %v1526_v34 = vpack.c.bf16 %v1481_v32, %v1480_v28  ;;  %v3011_v36 = vpop.f32.mrb[52].mxu1 }
 0x222   : > { %v1358_v37 = vadd.f32 %v3011_v36, %v3662_v40  ;;  %v1349_v39 = vpop.f32.mrb[53].mxu1 }
 0x223   : > { %v1350_v41 = vadd.f32 %v3662_v40, %v1349_v39  ;;  %v3012_v42 = vpop.f32.mrb[54].mxu1  ;;  %3077 = vmatprep.mubr.msk.bf16.mxu0 %vm1579_vm4, %v1526_v34 }
 0x224   : > { %v1361_v43 = vadd.f32 %v3012_v42, %v3662_v40  ;;  %v1352_v44 = vpop.f32.mrb[55].mxu1  ;;  %3078 = vmatmul.mubr.msk.bf16.gmra.mrb[88].mxu0 %vm1579_vm4, %v1527_v33  ;;  %v1486_v46 = vmax.f32 %v1358_v37, 0.0 }
 0x225   : > { %v1353_v45 = vadd.f32 %v3662_v40, %v1352_v44  ;;  %v1484_v48 = vmax.f32 %v1350_v41, 0.0 }
 0x226   : > { %v1487_v47 = vmax.f32 %v1361_v43, 0.0 }
 0x227   : > { %v1485_v49 = vmax.f32 %v1353_v45, 0.0 }
 0x228   : > { %v1529_v50 = vpack.c.bf16 %v1487_v47, %v1486_v46 }
 0x229   : > { %v1528_v51 = vpack.c.bf16 %v1485_v49, %v1484_v48  ;;  %v3015_v52 = vpop.f32.mrb[56].mxu1 }
 0x22a   : > { %v1374_v53 = vadd.f32 %v3015_v52, %v3662_v40  ;;  %v1365_v54 = vpop.f32.mrb[57].mxu1 }
 0x22b   : > { %v1366_v55 = vadd.f32 %v3662_v40, %v1365_v54  ;;  %v3016_v56 = vpop.f32.mrb[58].mxu1  ;;  %3081 = vmatprep.mubr.msk.bf16.mxu0 %vm1579_vm4, %v1528_v51 }
 0x22c   : > { %v1377_v57 = vadd.f32 %v3016_v56, %v3662_v40  ;;  %v1368_v58 = vpop.f32.mrb[59].mxu1  ;;  %3082 = vmatmul.mubr.msk.bf16.gmra.mrb[92].mxu0 %vm1579_vm4, %v1529_v50  ;;  %v1490_v60 = vmax.f32 %v1374_v53, 0.0 }
 0x22d   : > { %v1369_v59 = vadd.f32 %v3662_v40, %v1368_v58  ;;  %v1488_v62 = vmax.f32 %v1366_v55, 0.0 }
 0x22e   : > { %v1491_v61 = vmax.f32 %v1377_v57, 0.0 }
 0x22f   : > { %v1489_v63 = vmax.f32 %v1369_v59, 0.0  ;;  %v3207_v59 = vld [vmem:[%s4043_s7] sm:$0xff]  }
 0x230   : > { %v1531_v1 = vpack.c.bf16 %v1491_v61, %v1490_v60  ;;  %v3296_v60 = vmov 0.0   ;;  %v3209_v61 = vld [vmem:[%s4043_s7 + $0x10] sm:$0xff]  }
 0x231   : > { %v1530_v2 = vpack.c.bf16 %v1489_v63, %v1488_v62  ;;  %v3019_v4 = vpop.f32.mrb[60].mxu1  ;;  %3105 = vmatprep.subr.bf16.mxu1 %v3296_v60  ;;  %v3776_v62 = vld [vmem:[%s4042_s6] ss:$0 sm:$0xff]  ;;  %3113 = vmatprep.mubr.msk.bf16.mxu1 %vm3297_vm5, %v3296_v60 }
 0x232   : > { %v1390_v5 = vadd.f32 %v3019_v4, %v3662_v40  ;;  %v1381_v6 = vpop.f32.mrb[61].mxu1  ;;  %3106 = vmatpush3.bf16.msra.mxu1 %v3207_v59 }
 0x233   : > { %v1382_v7 = vadd.f32 %v3662_v40, %v1381_v6  ;;  %v3020_v8 = vpop.f32.mrb[62].mxu1  ;;  %3085 = vmatprep.mubr.msk.bf16.mxu0 %vm1579_vm4, %v1530_v2  ;;  %3107 = vmatprep.subr.bf16.mxu1 %v3296_v60 }
 0x234   : > { %v1393_v9 = vadd.f32 %v3020_v8, %v3662_v40  ;;  %v1384_v10 = vpop.f32.mrb[63].mxu1  ;;  %3086 = vmatmul.mubr.msk.bf16.gmra.mrb[96].mxu0 %vm1579_vm4, %v1531_v1  ;;  %v1494_v12 = vmax.f32 %v1390_v5, 0.0 }
 0x235   : > { %v1385_v11 = vadd.f32 %v3662_v40, %v1384_v10  ;;  %v1492_v14 = vmax.f32 %v1382_v7, 0.0 }
 0x236   : > { %v1495_v13 = vmax.f32 %v1393_v9, 0.0 }
 0x237   : > { %v1493_v15 = vmax.f32 %v1385_v11, 0.0 }
 0x238   : > { %v1533_v16 = vpack.c.bf16 %v1495_v13, %v1494_v12  ;;  %v3210_v12 = vld [vmem:[%s4043_s7 + $0x18] sm:$0xff]  }
 0x239   : > { %v1532_v17 = vpack.c.bf16 %v1493_v15, %v1492_v14  ;;  %v3023_v18 = vpop.f32.mrb[64].mxu1 }
 0x23a   : > { %v1406_v19 = vadd.f32 %v3023_v18, %v3662_v40  ;;  %v1397_v20 = vpop.f32.mrb[65].mxu1 }
 0x23b   : > { %v1398_v21 = vadd.f32 %v3662_v40, %v1397_v20  ;;  %v3024_v22 = vpop.f32.mrb[66].mxu1  ;;  %3089 = vmatprep.mubr.msk.bf16.mxu0 %vm1579_vm4, %v1532_v17 }
 0x23c   : > { %v1409_v23 = vadd.f32 %v3024_v22, %v3662_v40  ;;  %v1400_v24 = vpop.f32.mrb[67].mxu1  ;;  %3090 = vmatmul.mubr.msk.bf16.gmra.mrb[100].mxu0 %vm1579_vm4, %v1533_v16  ;;  %v1498_v35 = vmax.f32 %v1406_v19, 0.0 }
 0x23d   : > { %v1401_v38 = vadd.f32 %v3662_v40, %v1400_v24  ;;  %v1496_v3 = vmax.f32 %v1398_v21, 0.0 }
 0x23e   : > { %v1499_v25 = vmax.f32 %v1409_v23, 0.0 }
 0x23f   : > { %v1497_v26 = vmax.f32 %v1401_v38, 0.0 }
 0x240   : > { %v1535_v0 = vpack.c.bf16 %v1499_v25, %v1498_v35 }
 0x241   : > { %v1534_v27 = vpack.c.bf16 %v1497_v26, %v1496_v3  ;;  %v3027_v31 = vpop.f32.mrb[68].mxu1 }
 0x242   : > { %v1422_v29 = vadd.f32 %v3027_v31, %v3662_v40  ;;  %v1413_v30 = vpop.f32.mrb[69].mxu1 }
 0x243   : > { %v1414_v28 = vadd.f32 %v3662_v40, %v1413_v30  ;;  %v3028_v32 = vpop.f32.mrb[70].mxu1  ;;  %3093 = vmatprep.mubr.msk.bf16.mxu0 %vm1579_vm4, %v1534_v27 }
 0x244   : > { %v1425_v33 = vadd.f32 %v3028_v32, %v3662_v40  ;;  %v1416_v34 = vpop.f32.mrb[71].mxu1  ;;  %3094 = vmatmul.mubr.msk.bf16.gmra.mrb[104].mxu0 %vm1579_vm4, %v1535_v0  ;;  %v1502_v37 = vmax.f32 %v1422_v29, 0.0 }
 0x245   : > { %v1417_v36 = vadd.f32 %v3662_v40, %v1416_v34  ;;  %v1500_v41 = vmax.f32 %v1414_v28, 0.0 }
 0x246   : > { %v1503_v39 = vmax.f32 %v1425_v33, 0.0 }
 0x247   : > { %v1501_v42 = vmax.f32 %v1417_v36, 0.0 }
 0x248   : > { %v1537_v43 = vpack.c.bf16 %v1503_v39, %v1502_v37 }
 0x249   : > { %v1536_v44 = vpack.c.bf16 %v1501_v42, %v1500_v41  ;;  %v3031_v45 = vpop.f32.mrb[72].mxu1 }
 0x24a   : > { %v1438_v46 = vadd.f32 %v3031_v45, %v3662_v40  ;;  %v1429_v47 = vpop.f32.mrb[73].mxu1 }
 0x24b   : > { %v1430_v48 = vadd.f32 %v3662_v40, %v1429_v47  ;;  %v3032_v49 = vpop.f32.mrb[74].mxu1  ;;  %3097 = vmatprep.mubr.msk.bf16.mxu0 %vm1579_vm4, %v1536_v44 }
 0x24c   : > { %v1441_v50 = vadd.f32 %v3032_v49, %v3662_v40  ;;  %v1432_v51 = vpop.f32.mrb[75].mxu1  ;;  %3098 = vmatmul.mubr.msk.bf16.gmra.mrb[108].mxu0 %vm1579_vm4, %v1537_v43  ;;  %v1506_v53 = vmax.f32 %v1438_v46, 0.0 }
 0x24d   : > { %v1433_v52 = vadd.f32 %v3662_v40, %v1432_v51  ;;  %v1504_v55 = vmax.f32 %v1430_v48, 0.0  ;;  %v3208_v40 = vld [vmem:[%s4043_s7 + $0x8] sm:$0xff]  }
 0x24e   : > { %v1507_v54 = vmax.f32 %v1441_v50, 0.0  ;;  %3108 = vmatpush3.bf16.msra.mxu1 %v3208_v40 }
 0x24f   : > { %v1505_v56 = vmax.f32 %v1433_v52, 0.0  ;;  %3109 = vmatprep.subr.bf16.mxu1 %v3296_v60 }
 0x250   : > { %v1539_v57 = vpack.c.bf16 %v1507_v54, %v1506_v53 }
 0x251   : > { %v1538_v58 = vpack.c.bf16 %v1505_v56, %v1504_v55 }
 0x252   : > { %3110 = vmatpush3.bf16.msra.mxu1 %v3209_v61 }
 0x253   : > { %3101 = vmatprep.mubr.msk.bf16.mxu0 %vm1579_vm4, %v1538_v58  ;;  %3111 = vmatprep.subr.bf16.mxu1 %v3296_v60 }
 0x254   : > { %3102 = vmatmul.mubr.msk.bf16.gmra.mrb[112].mxu0 %vm1579_vm4, %v1539_v57 }
 0x256   : > { %3112 = vmatpush3.bf16.msra.mxu1 %v3210_v12 }
 0x257   : > { %3117 = vmatprep.subr.bf16.mxu1 %v3296_v60 }
 0x2af   : > { %v3043_v63 = vpop.f32.mrb[52].mxu0 }
 0x2b0   : > { %v1710_v1 = vpop.f32.mrb[53].mxu0  ;;  %v1719_v2 = vadd.f32 %v3043_v63, %v3776_v62 }
 0x2b1   : > { %v1711_v4 = vadd.f32 %v3776_v62, %v1710_v1  ;;  %v3044_v5 = vpop.f32.mrb[54].mxu0 }
 0x2b2   : > { %v1713_v6 = vpop.f32.mrb[55].mxu0  ;;  %v1722_v8 = vadd.f32 %v3044_v5, %v3776_v62  ;;  %v1967_v10 = vmax.f32 %v1719_v2, 0.0 }
 0x2b3   : > { %v1965_v7 = vmax.f32 %v1711_v4, 0.0  ;;  %v1714_v9 = vadd.f32 %v3776_v62, %v1713_v6 }
 0x2b4   : > { %v1968_v14 = vmax.f32 %v1722_v8, 0.0  ;;  %v2032_v19 = vsel %vm1579_vm4, %v1967_v10, -inf }
 0x2b5   : > { %v1966_v11 = vmax.f32 %v1714_v9, 0.0  ;;  %v2029_v13 = vsel %vm1579_vm4, %v1965_v7, -inf }
 0x2b6   : > { %v2034_v38 = vsel %vm1579_vm4, %v1968_v14, -inf }
 0x2b7   : > { %v2030_v15 = vsel %vm1579_vm4, %v1966_v11, -inf  ;;  %v3047_v16 = vpop.f32.mrb[56].mxu0 }
 0x2b8   : > { %v2031_v17 = vmax.f32 %v2029_v13, %v2030_v15  ;;  %v1726_v18 = vpop.f32.mrb[57].mxu0  ;;  %v1735_v20 = vadd.f32 %v3047_v16, %v3776_v62 }
 0x2b9   : > { %v1727_v21 = vadd.f32 %v3776_v62, %v1726_v18  ;;  %v3048_v22 = vpop.f32.mrb[58].mxu0 }
 0x2ba   : > { %v2033_v23 = vmax.f32 %v2031_v17, %v2032_v19  ;;  %v1729_v24 = vpop.f32.mrb[59].mxu0  ;;  %v1738_v25 = vadd.f32 %v3048_v22, %v3776_v62  ;;  %v1971_v0 = vmax.f32 %v1735_v20, 0.0 }
 0x2bb   : > { %v1969_v35 = vmax.f32 %v1727_v21, 0.0  ;;  %v1730_v3 = vadd.f32 %v3776_v62, %v1729_v24 }
 0x2bc   : > { %v2035_v26 = vmax.f32 %v2033_v23, %v2034_v38  ;;  %v1972_v30 = vmax.f32 %v1738_v25, 0.0  ;;  %v2040_v36 = vsel %vm1579_vm4, %v1971_v0, -inf }
 0x2bd   : > { %v2036_v27 = vsel %vm1579_vm4, %v1969_v35, -inf  ;;  %v1970_v31 = vmax.f32 %v1730_v3, 0.0 }
 0x2be   : > { %v2037_v29 = vmax.f32 %v2035_v26, %v2036_v27  ;;  %v2042_v44 = vsel %vm1579_vm4, %v1972_v30, -inf }
 0x2bf   : > { %v2038_v28 = vsel %vm1579_vm4, %v1970_v31, -inf  ;;  %v3051_v32 = vpop.f32.mrb[60].mxu0 }
 0x2c0   : > { %v2039_v33 = vmax.f32 %v2037_v29, %v2038_v28  ;;  %v1742_v34 = vpop.f32.mrb[61].mxu0  ;;  %v1751_v37 = vadd.f32 %v3051_v32, %v3776_v62 }
 0x2c1   : > { %v1743_v39 = vadd.f32 %v3776_v62, %v1742_v34  ;;  %v3052_v41 = vpop.f32.mrb[62].mxu0 }
 0x2c2   : > { %v2041_v42 = vmax.f32 %v2039_v33, %v2040_v36  ;;  %v1745_v43 = vpop.f32.mrb[63].mxu0  ;;  %v1754_v46 = vadd.f32 %v3052_v41, %v3776_v62  ;;  %v1975_v49 = vmax.f32 %v1751_v37, 0.0 }
 0x2c3   : > { %v1973_v45 = vmax.f32 %v1743_v39, 0.0  ;;  %v1746_v47 = vadd.f32 %v3776_v62, %v1745_v43 }
 0x2c4   : > { %v2043_v48 = vmax.f32 %v2041_v42, %v2042_v44  ;;  %v1976_v52 = vmax.f32 %v1754_v46, 0.0  ;;  %v2053_v58 = vsel %vm1579_vm4, %v1975_v49, -inf }
 0x2c5   : > { %v1974_v50 = vmax.f32 %v1746_v47, 0.0  ;;  %v2050_v51 = vsel %vm1579_vm4, %v1973_v45, -inf }
 0x2c6   : > { %v2044_v55 = vrot.slane %v2043_v48, 4  ;;  %v2055_v2 = vsel %vm1579_vm4, %v1976_v52, -inf }
 0x2c7   : > { %v2051_v53 = vsel %vm1579_vm4, %v1974_v50, -inf  ;;  %v3055_v54 = vpop.f32.mrb[64].mxu0 }
 0x2c8   : > { %v2052_v56 = vmax.f32 %v2050_v51, %v2051_v53  ;;  %v1758_v57 = vpop.f32.mrb[65].mxu0  ;;  %v1767_v59 = vadd.f32 %v3055_v54, %v3776_v62  ;;  %v2045_v7 = vmax.f32 %v2043_v48, %v2044_v55 }
 0x2c9   : > { %v1759_v40 = vadd.f32 %v3776_v62, %v1758_v57  ;;  %v3056_v61 = vpop.f32.mrb[66].mxu0 }
 0x2ca   : > { %v2054_v63 = vmax.f32 %v2052_v56, %v2053_v58  ;;  %v1761_v1 = vpop.f32.mrb[67].mxu0  ;;  %v1770_v5 = vadd.f32 %v3056_v61, %v3776_v62  ;;  %v1979_v9 = vmax.f32 %v1767_v59, 0.0  ;;  %v2046_v16 = vrot.slane %v2045_v7, 2 }
 0x2cb   : > { %v1977_v4 = vmax.f32 %v1759_v40, 0.0  ;;  %v1762_v6 = vadd.f32 %v3776_v62, %v1761_v1 }
 0x2cc   : > { %v2056_v8 = vmax.f32 %v2054_v63, %v2055_v2  ;;  %v1980_v13 = vmax.f32 %v1770_v5, 0.0  ;;  %v2061_v19 = vsel %vm1579_vm4, %v1979_v9, -inf  ;;  %v2047_v26 = vmax.f32 %v2045_v7, %v2046_v16 }
 0x2cd   : > { %v2057_v10 = vsel %vm1579_vm4, %v1977_v4, -inf  ;;  %v1978_v11 = vmax.f32 %v1762_v6, 0.0 }
 0x2ce   : > { %v2058_v12 = vmax.f32 %v2056_v8, %v2057_v10  ;;  %v2063_v38 = vsel %vm1579_vm4, %v1980_v13, -inf  ;;  %v2048_v34 = vrot.slane %v2047_v26, 1 }
 0x2cf   : > { %v2059_v14 = vsel %vm1579_vm4, %v1978_v11, -inf  ;;  %v3059_v15 = vpop.f32.mrb[68].mxu0 }
 0x2d0   : > { %v2060_v17 = vmax.f32 %v2058_v12, %v2059_v14  ;;  %v1774_v18 = vpop.f32.mrb[69].mxu0  ;;  %v1783_v20 = vadd.f32 %v3059_v15, %v3776_v62  ;;  %v2049_v52 = vmax.f32 %v2047_v26, %v2048_v34 }
 0x2d1   : > { %v1775_v21 = vadd.f32 %v3776_v62, %v1774_v18  ;;  %v3060_v22 = vpop.f32.mrb[70].mxu0 }
 0x2d2   : > { %v2062_v23 = vmax.f32 %v2060_v17, %v2061_v19  ;;  %v1777_v24 = vpop.f32.mrb[71].mxu0  ;;  %v1786_v25 = vadd.f32 %v3060_v22, %v3776_v62  ;;  %v1983_v27 = vmax.f32 %v1783_v20, 0.0  ;;  %v2197_v1 = vpack.c.bf16 %v2049_v52, %v2049_v52 }
 0x2d3   : > { %v1981_v35 = vmax.f32 %v1775_v21, 0.0  ;;  %v1778_v3 = vadd.f32 %v3776_v62, %v1777_v24 }
 0x2d4   : > { %v2064_v0 = vmax.f32 %v2062_v23, %v2063_v38  ;;  %v1984_v28 = vmax.f32 %v1786_v25, 0.0  ;;  %v2074_v41 = vsel %vm1579_vm4, %v1983_v27, -inf  ;;  %v2228_v17 = vunpack.c.l.b16 %v2197_v1 }
 0x2d5   : > { %v1982_v31 = vmax.f32 %v1778_v3, 0.0  ;;  %v2071_v30 = vsel %vm1579_vm4, %v1981_v35, -inf }
 0x2d6   : > { %v2065_v29 = vrot.slane %v2064_v0, 4  ;;  %v2076_v48 = vsel %vm1579_vm4, %v1984_v28, -inf }
 0x2d7   : > { %v2072_v32 = vsel %vm1579_vm4, %v1982_v31, -inf  ;;  %v3063_v33 = vpop.f32.mrb[72].mxu0 }
 0x2d8   : > { %v2066_v36 = vmax.f32 %v2064_v0, %v2065_v29  ;;  %v2073_v37 = vmax.f32 %v2071_v30, %v2072_v32  ;;  %v1790_v39 = vpop.f32.mrb[73].mxu0  ;;  %v1799_v42 = vadd.f32 %v3063_v33, %v3776_v62 }
 0x2d9   : > { %v1791_v43 = vadd.f32 %v3776_v62, %v1790_v39  ;;  %v3064_v44 = vpop.f32.mrb[74].mxu0 }
 0x2da   : > { %v2067_v45 = vrot.slane %v2066_v36, 2  ;;  %v2075_v46 = vmax.f32 %v2073_v37, %v2074_v41  ;;  %v1793_v47 = vpop.f32.mrb[75].mxu0  ;;  %v1802_v50 = vadd.f32 %v3064_v44, %v3776_v62  ;;  %v1987_v55 = vmax.f32 %v1799_v42, 0.0 }
 0x2db   : > { %v1985_v49 = vmax.f32 %v1791_v43, 0.0  ;;  %v1794_v51 = vadd.f32 %v3776_v62, %v1793_v47 }
 0x2dc   : > { %v2068_v53 = vmax.f32 %v2066_v36, %v2067_v45  ;;  %v2077_v54 = vmax.f32 %v2075_v46, %v2076_v48  ;;  %v1988_v40 = vmax.f32 %v1802_v50, 0.0  ;;  %v2082_v6 = vsel %vm1579_vm4, %v1987_v55, -inf }
 0x2dd   : > { %v2078_v56 = vsel %vm1579_vm4, %v1985_v49, -inf  ;;  %v1986_v57 = vmax.f32 %v1794_v51, 0.0 }
 0x2de   : > { %v2069_v58 = vrot.slane %v2068_v53, 1  ;;  %v2079_v59 = vmax.f32 %v2077_v54, %v2078_v56  ;;  %v2084_v13 = vsel %vm1579_vm4, %v1988_v40, -inf }
 0x2df   : > { %v2080_v61 = vsel %vm1579_vm4, %v1986_v57, -inf  ;;  %v3067_v63 = vpop.f32.mrb[76].mxu0 }
 0x2e0   : > { %v2070_v2 = vmax.f32 %v2068_v53, %v2069_v58  ;;  %v2081_v4 = vmax.f32 %v2079_v59, %v2080_v61  ;;  %v1806_v5 = vpop.f32.mrb[77].mxu0  ;;  %v1815_v7 = vadd.f32 %v3067_v63, %v3776_v62 }
 0x2e1   : > { %v1807_v8 = vadd.f32 %v3776_v62, %v1806_v5  ;;  %v3068_v9 = vpop.f32.mrb[78].mxu0 }
 0x2e2   : > { %v2198_v10 = vpack.c.bf16 %v2070_v2, %v2070_v2  ;;  %v2083_v11 = vmax.f32 %v2081_v4, %v2082_v6  ;;  %v1809_v12 = vpop.f32.mrb[79].mxu0  ;;  %v1818_v15 = vadd.f32 %v3068_v9, %v3776_v62  ;;  %v1991_v20 = vmax.f32 %v1815_v7, 0.0 }
 0x2e3   : > { %v1989_v14 = vmax.f32 %v1807_v8, 0.0  ;;  %v1810_v16 = vadd.f32 %v3776_v62, %v1809_v12 }
 0x2e4   : > { %v2229_v18 = vunpack.c.l.b16 %v2198_v10  ;;  %v2085_v19 = vmax.f32 %v2083_v11, %v2084_v13  ;;  %v1992_v38 = vmax.f32 %v1818_v15, 0.0  ;;  %v2095_v27 = vsel %vm1579_vm4, %v1991_v20, -inf }
 0x2e5   : > { %v1990_v21 = vmax.f32 %v1810_v16, 0.0  ;;  %v2092_v24 = vsel %vm1579_vm4, %v1989_v14, -inf }
 0x2e6   : > { %v2237_v22 = vsel %vm2236_vm6, %v2229_v18, %v2228_v17  ;;  %v2086_v23 = vrot.slane %v2085_v19, 4  ;;  %v2097_v34 = vsel %vm1579_vm4, %v1992_v38, -inf }
 0x2e7   : > { %v2093_v35 = vsel %vm1579_vm4, %v1990_v21, -inf  ;;  %v3071_v25 = vpop.f32.mrb[80].mxu0 }
 0x2e8   : > { %v2087_v3 = vmax.f32 %v2085_v19, %v2086_v23  ;;  %v2094_v26 = vmax.f32 %v2092_v24, %v2093_v35  ;;  %v1822_v0 = vpop.f32.mrb[81].mxu0  ;;  %v1831_v31 = vadd.f32 %v3071_v25, %v3776_v62 }
 0x2e9   : > { %v1823_v29 = vadd.f32 %v3776_v62, %v1822_v0  ;;  %v3072_v30 = vpop.f32.mrb[82].mxu0 }
 0x2ea   : > { %v2088_v28 = vrot.slane %v2087_v3, 2  ;;  %v2096_v32 = vmax.f32 %v2094_v26, %v2095_v27  ;;  %v1825_v33 = vpop.f32.mrb[83].mxu0  ;;  %v1834_v37 = vadd.f32 %v3072_v30, %v3776_v62  ;;  %v1995_v43 = vmax.f32 %v1831_v31, 0.0 }
 0x2eb   : > { %v1993_v36 = vmax.f32 %v1823_v29, 0.0  ;;  %v1826_v39 = vadd.f32 %v3776_v62, %v1825_v33 }
 0x2ec   : > { %v2089_v41 = vmax.f32 %v2087_v3, %v2088_v28  ;;  %v2098_v42 = vmax.f32 %v2096_v32, %v2097_v34  ;;  %v1996_v48 = vmax.f32 %v1834_v37, 0.0  ;;  %v2103_v54 = vsel %vm1579_vm4, %v1995_v43, -inf }
 0x2ed   : > { %v2099_v44 = vsel %vm1579_vm4, %v1993_v36, -inf  ;;  %v1994_v45 = vmax.f32 %v1826_v39, 0.0 }
 0x2ee   : > { %v2090_v46 = vrot.slane %v2089_v41, 1  ;;  %v2100_v47 = vmax.f32 %v2098_v42, %v2099_v44  ;;  %v2105_v61 = vsel %vm1579_vm4, %v1996_v48, -inf }
 0x2ef   : > { %v2101_v49 = vsel %vm1579_vm4, %v1994_v45, -inf  ;;  %v3075_v50 = vpop.f32.mrb[84].mxu0 }
 0x2f0   : > { %v2091_v51 = vmax.f32 %v2089_v41, %v2090_v46  ;;  %v2102_v52 = vmax.f32 %v2100_v47, %v2101_v49  ;;  %v1838_v53 = vpop.f32.mrb[85].mxu0  ;;  %v1847_v55 = vadd.f32 %v3075_v50, %v3776_v62 }
 0x2f1   : > { %v1839_v56 = vadd.f32 %v3776_v62, %v1838_v53  ;;  %v3076_v57 = vpop.f32.mrb[86].mxu0 }
 0x2f2   : > { %v2199_v58 = vpack.c.bf16 %v2091_v51, %v2091_v51  ;;  %v2104_v59 = vmax.f32 %v2102_v52, %v2103_v54  ;;  %v1841_v40 = vpop.f32.mrb[87].mxu0  ;;  %v1850_v1 = vadd.f32 %v3076_v57, %v3776_v62  ;;  %v1999_v6 = vmax.f32 %v1847_v55, 0.0 }
 0x2f3   : > { %v1997_v63 = vmax.f32 %v1839_v56, 0.0  ;;  %v1842_v2 = vadd.f32 %v3776_v62, %v1841_v40 }
 0x2f4   : > { %v2230_v4 = vunpack.c.l.b16 %v2199_v58  ;;  %v2106_v5 = vmax.f32 %v2104_v59, %v2105_v61  ;;  %v2000_v11 = vmax.f32 %v1850_v1, 0.0  ;;  %v2116_v17 = vsel %vm1579_vm4, %v1999_v6, -inf }
 0x2f5   : > { %v1998_v7 = vmax.f32 %v1842_v2, 0.0  ;;  %v2113_v10 = vsel %vm1579_vm4, %v1997_v63, -inf }
 0x2f6   : > { %v2239_v8 = vsel %vm2238_vm7, %v2230_v4, %v2237_v22  ;;  %v2107_v9 = vrot.slane %v2106_v5, 4  ;;  %v2118_v24 = vsel %vm1579_vm4, %v2000_v11, -inf }
 0x2f7   : > { %v2114_v12 = vsel %vm1579_vm4, %v1998_v7, -inf  ;;  %v3079_v13 = vpop.f32.mrb[88].mxu0 }
 0x2f8   : > { %v2108_v14 = vmax.f32 %v2106_v5, %v2107_v9  ;;  %v2115_v15 = vmax.f32 %v2113_v10, %v2114_v12  ;;  %v1854_v16 = vpop.f32.mrb[89].mxu0  ;;  %v1863_v18 = vadd.f32 %v3079_v13, %v3776_v62 }
 0x2f9   : > { %v1855_v19 = vadd.f32 %v3776_v62, %v1854_v16  ;;  %v3080_v20 = vpop.f32.mrb[90].mxu0 }
 0x2fa   : > { %v2109_v21 = vrot.slane %v2108_v14, 2  ;;  %v2117_v23 = vmax.f32 %v2115_v15, %v2116_v17  ;;  %v1857_v22 = vpop.f32.mrb[91].mxu0  ;;  %v1866_v35 = vadd.f32 %v3080_v20, %v3776_v62  ;;  %v2003_v0 = vmax.f32 %v1863_v18, 0.0 }
 0x2fb   : > { %v2001_v38 = vmax.f32 %v1855_v19, 0.0  ;;  %v1858_v25 = vadd.f32 %v3776_v62, %v1857_v22 }
 0x2fc   : > { %v2110_v3 = vmax.f32 %v2108_v14, %v2109_v21  ;;  %v2119_v26 = vmax.f32 %v2117_v23, %v2118_v24  ;;  %v2004_v28 = vmax.f32 %v1866_v35, 0.0  ;;  %v2124_v39 = vsel %vm1579_vm4, %v2003_v0, -inf }
 0x2fd   : > { %v2120_v27 = vsel %vm1579_vm4, %v2001_v38, -inf  ;;  %v2002_v31 = vmax.f32 %v1858_v25, 0.0 }
 0x2fe   : > { %v2111_v29 = vrot.slane %v2110_v3, 1  ;;  %v2121_v30 = vmax.f32 %v2119_v26, %v2120_v27  ;;  %v2126_v47 = vsel %vm1579_vm4, %v2004_v28, -inf }
 0x2ff   : > { %v2122_v32 = vsel %vm1579_vm4, %v2002_v31, -inf  ;;  %v3083_v33 = vpop.f32.mrb[92].mxu0 }
 0x300   : > { %v2112_v34 = vmax.f32 %v2110_v3, %v2111_v29  ;;  %v2123_v36 = vmax.f32 %v2121_v30, %v2122_v32  ;;  %v1870_v37 = vpop.f32.mrb[93].mxu0  ;;  %v1879_v41 = vadd.f32 %v3083_v33, %v3776_v62 }
 0x301   : > { %v1871_v42 = vadd.f32 %v3776_v62, %v1870_v37  ;;  %v3084_v43 = vpop.f32.mrb[94].mxu0 }
 0x302   : > { %v2200_v44 = vpack.c.bf16 %v2112_v34, %v2112_v34  ;;  %v2125_v45 = vmax.f32 %v2123_v36, %v2124_v39  ;;  %v1873_v46 = vpop.f32.mrb[95].mxu0  ;;  %v1882_v49 = vadd.f32 %v3084_v43, %v3776_v62  ;;  %v2007_v53 = vmax.f32 %v1879_v41, 0.0 }
 0x303   : > { %v2005_v48 = vmax.f32 %v1871_v42, 0.0  ;;  %v1874_v50 = vadd.f32 %v3776_v62, %v1873_v46 }
 0x304   : > { %v2231_v51 = vunpack.c.l.b16 %v2200_v44  ;;  %v2127_v52 = vmax.f32 %v2125_v45, %v2126_v47  ;;  %v2008_v58 = vmax.f32 %v1882_v49, 0.0  ;;  %v2137_v2 = vsel %vm1579_vm4, %v2007_v53, -inf }
 0x305   : > { %v2006_v54 = vmax.f32 %v1874_v50, 0.0  ;;  %v2134_v57 = vsel %vm1579_vm4, %v2005_v48, -inf }
 0x306   : > { %v2241_v55 = vsel %vm2240_vm8, %v2231_v51, %v2239_v8  ;;  %v2128_v56 = vrot.slane %v2127_v52, 4  ;;  %v2139_v10 = vsel %vm1579_vm4, %v2008_v58, -inf }
 0x307   : > { %v2135_v59 = vsel %vm1579_vm4, %v2006_v54, -inf  ;;  %v3087_v40 = vpop.f32.mrb[96].mxu0 }
 0x308   : > { %v2129_v61 = vmax.f32 %v2127_v52, %v2128_v56  ;;  %v2136_v63 = vmax.f32 %v2134_v57, %v2135_v59  ;;  %v1886_v1 = vpop.f32.mrb[97].mxu0  ;;  %v1895_v4 = vadd.f32 %v3087_v40, %v3776_v62 }
 0x309   : > { %v1887_v5 = vadd.f32 %v3776_v62, %v1886_v1  ;;  %v3088_v6 = vpop.f32.mrb[98].mxu0 }
 0x30a   : > { %v2130_v7 = vrot.slane %v2129_v61, 2  ;;  %v2138_v9 = vmax.f32 %v2136_v63, %v2137_v2  ;;  %v1889_v8 = vpop.f32.mrb[99].mxu0  ;;  %v1898_v12 = vadd.f32 %v3088_v6, %v3776_v62  ;;  %v2011_v16 = vmax.f32 %v1895_v4, 0.0 }
 0x30b   : > { %v2009_v11 = vmax.f32 %v1887_v5, 0.0  ;;  %v1890_v13 = vadd.f32 %v3776_v62, %v1889_v8 }
 0x30c   : > { %v2131_v14 = vmax.f32 %v2129_v61, %v2130_v7  ;;  %v2140_v15 = vmax.f32 %v2138_v9, %v2139_v10  ;;  %v2012_v21 = vmax.f32 %v1898_v12, 0.0  ;;  %v2145_v25 = vsel %vm1579_vm4, %v2011_v16, -inf }
 0x30d   : > { %v2141_v17 = vsel %vm1579_vm4, %v2009_v11, -inf  ;;  %v2010_v18 = vmax.f32 %v1890_v13, 0.0 }
 0x30e   : > { %v2132_v19 = vrot.slane %v2131_v14, 1  ;;  %v2142_v20 = vmax.f32 %v2140_v15, %v2141_v17  ;;  %v2147_v30 = vsel %vm1579_vm4, %v2012_v21, -inf }
 0x30f   : > { %v2143_v23 = vsel %vm1579_vm4, %v2010_v18, -inf  ;;  %v3091_v22 = vpop.f32.mrb[100].mxu0 }
 0x310   : > { %v2133_v24 = vmax.f32 %v2131_v14, %v2132_v19  ;;  %v2144_v38 = vmax.f32 %v2142_v20, %v2143_v23  ;;  %v1902_v35 = vpop.f32.mrb[101].mxu0  ;;  %v1911_v3 = vadd.f32 %v3091_v22, %v3776_v62 }
 0x311   : > { %v1903_v26 = vadd.f32 %v3776_v62, %v1902_v35  ;;  %v3092_v0 = vpop.f32.mrb[102].mxu0 }
 0x312   : > { %v2201_v27 = vpack.c.bf16 %v2133_v24, %v2133_v24  ;;  %v2146_v31 = vmax.f32 %v2144_v38, %v2145_v25  ;;  %v1905_v29 = vpop.f32.mrb[103].mxu0  ;;  %v1914_v32 = vadd.f32 %v3092_v0, %v3776_v62  ;;  %v2015_v37 = vmax.f32 %v1911_v3, 0.0 }
 0x313   : > { %v2013_v28 = vmax.f32 %v1903_v26, 0.0  ;;  %v1906_v33 = vadd.f32 %v3776_v62, %v1905_v29 }
 0x314   : > { %v2232_v34 = vunpack.c.l.b16 %v2201_v27  ;;  %v2148_v36 = vmax.f32 %v2146_v31, %v2147_v30  ;;  %v2016_v44 = vmax.f32 %v1914_v32, 0.0  ;;  %v2158_v50 = vsel %vm1579_vm4, %v2015_v37, -inf }
 0x315   : > { %v2014_v39 = vmax.f32 %v1906_v33, 0.0  ;;  %v2155_v43 = vsel %vm1579_vm4, %v2013_v28, -inf }
 0x316   : > { %v2243_v41 = vsel %vm2242_vm9, %v2232_v34, %v2241_v55  ;;  %v2149_v42 = vrot.slane %v2148_v36, 4  ;;  %v2160_v57 = vsel %vm1579_vm4, %v2016_v44, -inf }
 0x317   : > { %v2156_v45 = vsel %vm1579_vm4, %v2014_v39, -inf  ;;  %v3095_v46 = vpop.f32.mrb[104].mxu0 }
 0x318   : > { %v2150_v47 = vmax.f32 %v2148_v36, %v2149_v42  ;;  %v2157_v48 = vmax.f32 %v2155_v43, %v2156_v45  ;;  %v1918_v49 = vpop.f32.mrb[105].mxu0  ;;  %v1927_v51 = vadd.f32 %v3095_v46, %v3776_v62 }
 0x319   : > { %v1919_v52 = vadd.f32 %v3776_v62, %v1918_v49  ;;  %v3096_v53 = vpop.f32.mrb[106].mxu0 }
 0x31a   : > { %v2151_v54 = vrot.slane %v2150_v47, 2  ;;  %v2159_v56 = vmax.f32 %v2157_v48, %v2158_v50  ;;  %v1921_v55 = vpop.f32.mrb[107].mxu0  ;;  %v1930_v59 = vadd.f32 %v3096_v53, %v3776_v62  ;;  %v2019_v1 = vmax.f32 %v1927_v51, 0.0 }
 0x31b   : > { %v2017_v58 = vmax.f32 %v1919_v52, 0.0  ;;  %v1922_v40 = vadd.f32 %v3776_v62, %v1921_v55 }
 0x31c   : > { %v2152_v61 = vmax.f32 %v2150_v47, %v2151_v54  ;;  %v2161_v63 = vmax.f32 %v2159_v56, %v2160_v57  ;;  %v2020_v7 = vmax.f32 %v1930_v59, 0.0  ;;  %v2166_v13 = vsel %vm1579_vm4, %v2019_v1, -inf }
 0x31d   : > { %v2162_v2 = vsel %vm1579_vm4, %v2017_v58, -inf  ;;  %v2018_v4 = vmax.f32 %v1922_v40, 0.0 }
 0x31e   : > { %v2153_v5 = vrot.slane %v2152_v61, 1  ;;  %v2163_v6 = vmax.f32 %v2161_v63, %v2162_v2  ;;  %v2168_v20 = vsel %vm1579_vm4, %v2020_v7, -inf }
 0x31f   : > { %v2164_v9 = vsel %vm1579_vm4, %v2018_v4, -inf  ;;  %v3099_v8 = vpop.f32.mrb[108].mxu0 }
 0x320   : > { %v2154_v10 = vmax.f32 %v2152_v61, %v2153_v5  ;;  %v2165_v11 = vmax.f32 %v2163_v6, %v2164_v9  ;;  %v1934_v12 = vpop.f32.mrb[109].mxu0  ;;  %v1943_v14 = vadd.f32 %v3099_v8, %v3776_v62 }
 0x321   : > { %v1935_v15 = vadd.f32 %v3776_v62, %v1934_v12  ;;  %v3100_v16 = vpop.f32.mrb[110].mxu0  ;;  %v3211_v12 = vld [vmem:[%s4045_s9] sm:$0xff]  }
 0x322   : > { %v2202_v17 = vpack.c.bf16 %v2154_v10, %v2154_v10  ;;  %v2167_v18 = vmax.f32 %v2165_v11, %v2166_v13  ;;  %v1937_v19 = vpop.f32.mrb[111].mxu0  ;;  %v1946_v23 = vadd.f32 %v3100_v16, %v3776_v62  ;;  %v2023_v35 = vmax.f32 %v1943_v14, 0.0  ;;  %v3212_v14 = vld [vmem:[%s4045_s9 + $0x8] sm:$0xff]   ;;  %v3214_v16 = vld [vmem:[%s4045_s9 + $0x18] sm:$0xff]  }
 0x323   : > { %v2021_v21 = vmax.f32 %v1935_v15, 0.0  ;;  %v1938_v22 = vadd.f32 %v3776_v62, %v1937_v19  ;;  %v3213_v15 = vld [vmem:[%s4045_s9 + $0x10] sm:$0xff]  }
 0x324   : > { %v2233_v24 = vunpack.c.l.b16 %v2202_v17  ;;  %v2169_v38 = vmax.f32 %v2167_v18, %v2168_v20  ;;  %v2024_v27 = vmax.f32 %v1946_v23, 0.0  ;;  %v2179_v33 = vsel %vm1579_vm4, %v2023_v35, -inf  ;;  %v3215_v17 = vld [vmem:[%s4045_s9 + $0x20] sm:$0xff]   ;;  %v3216_v18 = vld [vmem:[%s4045_s9 + $0x28] sm:$0xff]   ;;  %v3217_v19 = vld [vmem:[%s4045_s9 + $0x30] sm:$0xff]  }
 0x325   : > { %v2022_v25 = vmax.f32 %v1938_v22, 0.0  ;;  %v2176_v0 = vsel %vm1579_vm4, %v2021_v21, -inf  ;;  %v3218_v20 = vld [vmem:[%s4045_s9 + $0x38] sm:$0xff]   ;;  %v2745_v21 = vld [vmem:[%s4044_s8] ss:$0 sm:$0xff] }
 0x326   : > { %v2245_v3 = vsel %vm2244_vm10, %v2233_v24, %v2243_v41  ;;  %v2170_v26 = vrot.slane %v2169_v38, 4  ;;  %v2181_v43 = vsel %vm1579_vm4, %v2024_v27, -inf  ;;  %v3221_v27 = vld [vmem:[%s4047_s11 + $0x10] sm:$0xff]  }
 0x327   : > { %v2177_v31 = vsel %vm1579_vm4, %v2022_v25, -inf  ;;  %v3103_v29 = vpop.f32.mrb[112].mxu0 }
 0x328   : > { %v2171_v30 = vmax.f32 %v2169_v38, %v2170_v26  ;;  %v2178_v28 = vmax.f32 %v2176_v0, %v2177_v31  ;;  %v1950_v32 = vpop.f32.mrb[113].mxu0  ;;  %v1959_v34 = vadd.f32 %v3103_v29, %v3776_v62  ;;  %v3220_v0 = vld [vmem:[%s4047_s11 + $0x8] sm:$0xff]   ;;  %v3222_v31 = vld [vmem:[%s4047_s11 + $0x18] sm:$0xff]   ;;  %v3223_v29 = vld [vmem:[%s4047_s11 + $0x20] sm:$0xff]  }
 0x329   : > { %v1951_v36 = vadd.f32 %v3776_v62, %v1950_v32  ;;  %v3104_v37 = vpop.f32.mrb[114].mxu0  ;;  %v3226_v32 = vld [vmem:[%s4047_s11 + $0x38] sm:$0xff]  }
 0x32a   : > { %v2172_v39 = vrot.slane %v2171_v30, 2  ;;  %v2180_v42 = vmax.f32 %v2178_v28, %v2179_v33  ;;  %v1953_v41 = vpop.f32.mrb[115].mxu0  ;;  %v1962_v45 = vadd.f32 %v3104_v37, %v3776_v62  ;;  %v2027_v49 = vmax.f32 %v1959_v34, 0.0  ;;  %v3225_v28 = vld [vmem:[%s4047_s11 + $0x30] sm:$0xff]   ;;  %v2751_v33 = vld [vmem:[%s4046_s10] ss:$0 sm:$0xff] }
 0x32b   : > { %v2025_v44 = vmax.f32 %v1951_v36, 0.0  ;;  %v1954_v46 = vadd.f32 %v3776_v62, %v1953_v41 }
 0x32c   : > { %v2173_v47 = vmax.f32 %v2171_v30, %v2172_v39  ;;  %v2182_v48 = vmax.f32 %v2180_v42, %v2181_v43  ;;  %v2028_v54 = vmax.f32 %v1962_v45, 0.0  ;;  %v2187_v58 = vsel %vm1579_vm4, %v2027_v49, -inf  ;;  %v3224_v30 = vld [vmem:[%s4047_s11 + $0x28] sm:$0xff]  }
 0x32d   : > { %v2183_v50 = vsel %vm1579_vm4, %v2025_v44, -inf  ;;  %v2026_v51 = vmax.f32 %v1954_v46, 0.0  ;;  %v2544_v44 = vlaneseq }
 0x32e   : > { %v2174_v52 = vrot.slane %v2173_v47, 1  ;;  %v2184_v53 = vmax.f32 %v2182_v48, %v2183_v50  ;;  %v2189_v62 = vsel %vm1579_vm4, %v2028_v54, -inf }
 0x32f   : > { %v2185_v56 = vsel %vm1579_vm4, %v2026_v51, -inf  ;;  %v2545_v45 = vand.u32 127, %v2544_v44 }
 0x330   : > { %v2175_v55 = vmax.f32 %v2173_v47, %v2174_v52  ;;  %v2186_v57 = vmax.f32 %v2184_v53, %v2185_v56 }
 0x331   : > { %vm2546_vm13 = vcmp.lt.s32.totalorder %v2545_v45, 4  ;;  %vm2557_vm14 = vcmp.eq.s32.totalorder %v2545_v45, 4 }
 0x332   : > { %v2203_v59 = vpack.c.bf16 %v2175_v55, %v2175_v55  ;;  %v2188_v40 = vmax.f32 %v2186_v57, %v2187_v58 }
 0x334   : > { %v2234_v61 = vunpack.c.l.b16 %v2203_v59  ;;  %v2190_v63 = vmax.f32 %v2188_v40, %v2189_v62 }
 0x336   : > { %v2247_v1 = vsel %vm2246_vm11, %v2234_v61, %v2245_v3  ;;  %v2191_v2 = vrot.slane %v2190_v63, 4  ;;  %v3219_v3 = vld [vmem:[%s4047_s11] sm:$0xff]  }
 0x338   : > { %v2192_v4 = vmax.f32 %v2190_v63, %v2191_v2 }
 0x33a   : > { %v2193_v5 = vrot.slane %v2192_v4, 2 }
 0x33c   : > { %v2194_v6 = vmax.f32 %v2192_v4, %v2193_v5 }
 0x33e   : > { %v2195_v7 = vrot.slane %v2194_v6, 1 }
 0x340   : > { %v2196_v9 = vmax.f32 %v2194_v6, %v2195_v7 }
 0x342   : > { %v2204_v8 = vpack.c.bf16 %v2196_v9, %v2196_v9 }
 0x344   : > { %v2235_v10 = vunpack.c.l.b16 %v2204_v8 }
 0x346   : > { %v2249_v11 = vsel %vm2248_vm12, %v2235_v10, %v2247_v1 }
 0x347   : > { %v2250_v13 = vpack.c.b16 %v2249_v11, %v2249_v11 }
 0x349   : > { %3114 = vmatmul.mubr.msk.bf16.vlgmr.msra.gmra.mrb[76].mxu1 %vm1579_vm4, %v2250_v13 }
 0x34a   : > { %3118 = vmatpush3.bf16.msra.mxu1 %v3211_v12  ;;  %3133 = vmatprep.mubr.msk.bf16.mxu1 %vm3297_vm5, %v3296_v60 }
 0x34b   : > { %3119 = vmatprep.subr.bf16.mxu1 %v3296_v60 }
 0x34e   : > { %3120 = vmatpush3.bf16.msra.mxu1 %v3212_v14 }
 0x34f   : > { %3121 = vmatprep.subr.bf16.mxu1 %v3296_v60 }
 0x352   : > { %3122 = vmatpush3.bf16.msra.mxu1 %v3213_v15 }
 0x353   : > { %3123 = vmatprep.subr.bf16.mxu1 %v3296_v60 }
 0x356   : > { %3124 = vmatpush3.bf16.msra.mxu1 %v3214_v16 }
 0x357   : > { %3125 = vmatprep.subr.bf16.mxu1 %v3296_v60 }
 0x35a   : > { %3126 = vmatpush3.bf16.msra.mxu1 %v3215_v17 }
 0x35b   : > { %3127 = vmatprep.subr.bf16.mxu1 %v3296_v60 }
 0x35e   : > { %3128 = vmatpush3.bf16.msra.mxu1 %v3216_v18 }
 0x35f   : > { %3129 = vmatprep.subr.bf16.mxu1 %v3296_v60 }
 0x362   : > { %3130 = vmatpush3.bf16.msra.mxu1 %v3217_v19 }
 0x363   : > { %3131 = vmatprep.subr.bf16.mxu1 %v3296_v60 }
 0x366   : > { %3132 = vmatpush3.bf16.msra.mxu1 %v3218_v20 }
 0x367   : > { %3137 = vmatprep.subr.bf16.mxu1 %v3296_v60 }
 0x41c   : > { %v2312_v23 = vpop.f32.mrb[76].mxu1 }
 0x41d   : > { %v2313_v22 = vadd.f32 %v2745_v21, %v2312_v23  ;;  %v3115_v24 = vpop.f32.mrb[77].mxu1 }
 0x41e   : > { %v2315_v38 = vpop.f32.mrb[78].mxu1 }
 0x41f   : > { %v2318_v35 = vmax.f32 %v2313_v22, 0.0  ;;  %v3116_v25 = vpop.f32.mrb[79].mxu1 }
 0x421   : > { %v2319_v26 = vpack.c.bf16 %v2318_v35, %v2318_v35 }
 0x423   : > { %3134 = vmatmul.mubr.bf16.vlgmr.msra.gmra.mrb[80].mxu1 %v2319_v26 }
 0x424   : > { %3138 = vmatpush3.bf16.msra.mxu1 %v3219_v3  ;;  %3153 = vmatprep.mubr.msk.bf16.mxu1 %vm3297_vm5, %v3296_v60 }
 0x425   : > { %3139 = vmatprep.subr.bf16.mxu1 %v3296_v60 }
 0x428   : > { %3140 = vmatpush3.bf16.msra.mxu1 %v3220_v0 }
 0x429   : > { %3141 = vmatprep.subr.bf16.mxu1 %v3296_v60 }
 0x42c   : > { %3142 = vmatpush3.bf16.msra.mxu1 %v3221_v27 }
 0x42d   : > { %3143 = vmatprep.subr.bf16.mxu1 %v3296_v60 }
 0x430   : > { %3144 = vmatpush3.bf16.msra.mxu1 %v3222_v31 }
 0x431   : > { %3145 = vmatprep.subr.bf16.mxu1 %v3296_v60 }
 0x434   : > { %3146 = vmatpush3.bf16.msra.mxu1 %v3223_v29 }
 0x435   : > { %3147 = vmatprep.subr.bf16.mxu1 %v3296_v60 }
 0x438   : > { %3148 = vmatpush3.bf16.msra.mxu1 %v3224_v30 }
 0x439   : > { %3149 = vmatprep.subr.bf16.mxu1 %v3296_v60 }
 0x43c   : > { %3150 = vmatpush3.bf16.msra.mxu1 %v3225_v28 }
 0x43d   : > { %3151 = vmatprep.subr.bf16.mxu1 %v3296_v60  ;;  %v2760_v60 = vld [vmem:[%s4048_s12] ss:$0 sm:$0xff] }
 0x440   : > { %3152 = vmatpush3.bf16.msra.mxu1 %v3226_v32 }
 0x4f6   : > { %v2425_v34 = vpop.f32.mrb[80].mxu1 }
 0x4f7   : > { %v2426_v36 = vadd.f32 %v2751_v33, %v2425_v34  ;;  %v3135_v37 = vpop.f32.mrb[81].mxu1 }
 0x4f8   : > { %v2428_v39 = vpop.f32.mrb[82].mxu1 }
 0x4f9   : > { %v2431_v42 = vmax.f32 %v2426_v36, 0.0  ;;  %v3136_v41 = vpop.f32.mrb[83].mxu1 }
 0x4fb   : > { %v2432_v43 = vpack.c.bf16 %v2431_v42, %v2431_v42 }
 0x4fd   : > { %3154 = vmatmul.mubr.bf16.vlgmr.msra.gmra.mrb[84].mxu1 %v2432_v43 }
 0x5d0   : > { %v2538_v46 = vpop.f32.mrb[84].mxu1 }
 0x5d1   : > { %v2539_v47 = vadd.f32 %v2760_v60, %v2538_v46  ;;  %v3155_v48 = vpop.f32.mrb[85].mxu1 }
 0x5d2   : > { %v2541_v49 = vpop.f32.mrb[86].mxu1 }
 0x5d3   : > { %v3156_v50 = vpop.f32.mrb[87].mxu1  ;;  %v2547_v51 = vsel %vm2546_vm13, %v2539_v47, -inf }
 0x5d4   : > { %2548 = vmax.xlane.f32.xlu0 %v2547_v51 }
 0x661   : > { %v2549_v52 = vpop.xlane.xlu0 %2548 }
 0x662   : > { %v2550_v53 = vsub.f32 %v2547_v51, %v2549_v52 }
 0x664   : > { %v2551_v54 = vmul.f32 1.442695, %v2550_v53 }
 0x666   : > { %3227 = vpow2.f32 %v2551_v54 }
 0x670   : > { %v3228_v56 = vpop.eup %3227 }
 0x671   : > { %2553 = vadd.xlane.f32.xlu0 %v3228_v56 }
 0x6fe   : > { %v2554_v55 = vpop.xlane.xlu0 %2553 }
 0x6ff   : > { %3229 = vrcp.f32 %v2554_v55 }
 0x709   : > { %v3230_v57 = vpop.eup %3229 }
 0x70a   : > { %v2556_v58 = vmul.f32 %v3230_v57, %v3228_v56 }
 0x70c   : > { %v2558_v59 = vsel %vm2557_vm14, %v2539_v47, %v2556_v58 }
 0x70d   : > { %2559 = vst [vmem:[%s434_s22] sm:$0xff] %v2558_v59 }
 0x70e   : > { %3244 = shalt.err (!%p3241_p3)
}
 0x70f   : > { %s3245_s16 = scalar_lea.hbm %s3994_s15, 128  ;;  %s3249_s24 = scalar_lea.hbm %s4049_s13, 256 }
 0x710   : > { %p3246_p4 = scmp.ne.s32.totalorder %s3994_s15, %s3245_s16  ;;  %p3250_p9 = scmp.lt.u32.totalorder %s3994_s15, %s4049_s13 }
 0x711   : > { %p3251_p10 = scmp.lt.u32.totalorder %s3249_s24, %s3245_s16  ;;  %p3253_p12 = scmp.lt.u32.totalorder %s3245_s16, %s3994_s15 }
 0x712   : > { %p3247_p7 = pnand %p3246_p4, %p3407_p5 }
 0x713   : > { %p3252_p11 = por %p3251_p10, %p3250_p9 }
 0x714   : > { %p3248_p8 = pneg %p3247_p7 }
 0x715   : > { %p3254_p13 = por %p3253_p12, %p3252_p11 }
 0x717   : > { %p3255_p0 = pnand %p3254_p13, %p3248_p8 }
 0x719   : > { %3258 = shalt.err (!%p3255_p0)
}
 0x71a   : > { %3159 = dma.vmem_to_hbm [thread:$0]  (%p3407_p5), %s3996_s23, 128, %s3994_s15, %s2561_s0  }
 0x71b PF: > { %p3165_p1 = scmp.ge.s32.totalorder %s3293_s28, 2  ;;  %s2586_s1 = sand.u32 1, %s3281_s25  }
 0x71c   : > { %s2587_s2 = scalar_lea.sflag [#allocation3], %s2586_s1 }
 0x71d   : > { %p3162_p2 = pnand %p3165_p1, %p3411_p6 }
 0x71f   : > { %3276 = dma.done.wait (!%p3162_p2), %s2587_s2, 128  }
 0x720   : > { %3278 = vsyncadd (!%p3162_p2), %s2587_s2, 4294967168  ;;  %p23_p3 = scmp.ge.s32.totalorder %s3394_s14, 4   ;;  %s4058_s25 = smov %s3285_s26 }
 0x721   : > { %s4059_s26 = smov %s3289_s27  ;;  %s4060_s27 = smov %s3405_s17 }
 0x722   : > { %s4061_s28 = smov %s3394_s14  ;;  %25 = sbr.rel (!%p23_p3) target bundleno = 7 (0x7), region = 107 }
 0x729   :  { %2592 = vsyncpa [#allocation3], 1 }
 0x72a   :  { %2594 = vsyncpa [#allocation3 + $0x1], 1 }

</bundles_post_ra>
